<compile_context>
chip_gen: v6e
topology: v6e:2x2x1
jax: 0.10.0
libtpu: 0.0.40
codegen_flags: <defaults>
</compile_context>

<pallas_src>
import functools

import jax
import jax.numpy as jnp
from jax.experimental import pallas as pl
from jax.experimental.pallas import tpu as pltpu


def bn_relu_conv_kernel(xp_ref, bn_ref, w_ref, o_ref, *, ksize):
    # xp_ref: (1, H+2p, W+2p, C)  zero ring-padded raw input image (full image
    #                              resident in VMEM, revisited across row tiles)
    # bn_ref: (2, C)              rows = [scale, shift] (folded eval BatchNorm)
    # w_ref:  (K*K*C, Cout) bf16  conv weight, row index = (dh*K + dw)*C + c
    # o_ref:  (1, TH, W, Cout)    lane-dense output row tile
    _, Hp, Wp, C = xp_ref.shape
    p = (ksize - 1) // 2
    H, W = Hp - 2 * p, Wp - 2 * p
    TH = o_ref.shape[1]
    Cout = o_ref.shape[3]

    i = pl.program_id(1)
    row0 = pl.multiple_of(i * TH, TH)           # top padded-row of this tile's halo window

    # (TH+2p, W+2p, C) halo window; dynamic offset only along the leading (row) dim.
    win = xp_ref[0, pl.ds(row0, TH + 2 * p), :, :]

    scale = bn_ref[0:1, :].reshape(1, 1, C)
    shift = bn_ref[1:2, :].reshape(1, 1, C)

    # BatchNorm (folded) + ReLU on the padded window (f32 VPU math).
    y = jnp.maximum(win * scale + shift, 0.0)

    if p > 0:
        # The conv pads with zeros AFTER bn+relu; re-zero the BN'd ring using an
        # in-kernel border mask (no DMA'd mask tensor).
        r = row0 + jax.lax.broadcasted_iota(jnp.int32, (TH + 2 * p, W + 2 * p, C), 0)
        c = jax.lax.broadcasted_iota(jnp.int32, (TH + 2 * p, W + 2 * p, C), 1)
        valid = (r >= p) & (r < H + p) & (c >= p) & (c < W + p)
        y = jnp.where(valid, y, 0.0)

    # im2col-lite: gather the K*K taps along channels and do ONE MXU matmul
    # (bf16 operands, f32 accumulation).
    taps = [y[dh:dh + TH, dw:dw + W, :] for dh in range(ksize) for dw in range(ksize)]
    patch = jnp.concatenate(taps, axis=-1).reshape(TH * W, ksize * ksize * C)
    out = jnp.dot(patch.astype(jnp.bfloat16), w_ref[...],
                  preferred_element_type=jnp.float32)          # (TH*W, Cout)

    o_ref[...] = out.reshape(1, TH, W, Cout)                   # lane-dense store


def conv_forward(x, scale, shift, w, *, kernel_size, tile_h=8):
    """BN(eval, folded) -> ReLU -> Conv2d(kernel_size, stride=1, groups=1, bias=False).

    x: (N, H, W, C) f32 NHWC, w: (K, K, C, Cout) f32. Returns (N, H, W, Cout) f32.
    """
    N, H, W, C = x.shape
    K = kernel_size
    p = (K - 1) // 2
    Cout = w.shape[-1]
    TH = tile_h
    assert w.shape == (K, K, C, Cout)
    assert H % TH == 0 and TH % 8 == 0, "tile_h must divide H and be a multiple of 8"
    assert Cout % 128 == 0, "lane-dense output stores require Cout % 128 == 0"
    nH = H // TH

    xp = jnp.pad(x, ((0, 0), (p, p), (p, p), (0, 0)))                      # ring pad
    bn = jnp.stack([scale, shift], axis=0).astype(jnp.float32)             # (2, C)
    wflat = w.reshape(K * K * C, Cout).astype(jnp.bfloat16)                # (K*K*C, Cout)

    return pl.pallas_call(
        functools.partial(bn_relu_conv_kernel, ksize=K),
        out_shape=jax.ShapeDtypeStruct((N, H, W, Cout), jnp.float32),
        grid=(N, nH),
        in_specs=[
            # Full padded image per batch element; block index constant over the
            # row-tile axis so the image is DMA'd from HBM only once per n.
            pl.BlockSpec((1, H + 2 * p, W + 2 * p, C), lambda n, i: (n, 0, 0, 0)),
            pl.BlockSpec((2, C), lambda n, i: (0, 0)),
            pl.BlockSpec((K * K * C, Cout), lambda n, i: (0, 0)),
        ],
        out_specs=pl.BlockSpec((1, TH, W, Cout), lambda n, i: (n, i, 0, 0)),
        compiler_params=pltpu.CompilerParams(
            dimension_semantics=("parallel", "parallel"),
            vmem_limit_bytes=48 * 1024 * 1024,
        ),
    )(xp, bn, wflat)


def ref_forward(x, scale, shift, w, kernel_size):
    """Pure-JAX f32 reference of BN(folded) -> ReLU -> KxK conv (stride 1, same pad)."""
    N, H, W, C = x.shape
    K = kernel_size
    p = (K - 1) // 2
    Cout = w.shape[-1]
    y = jnp.maximum(x * scale.reshape(1, 1, 1, C) + shift.reshape(1, 1, 1, C), 0.0)
    yp = jnp.pad(y, ((0, 0), (p, p), (p, p), (0, 0)))
    out = jnp.zeros((N, H, W, Cout), jnp.float32)
    for dh in range(K):
        for dw in range(K):
            out = out + jnp.einsum("nhwc,cd->nhwd", yp[:, dh:dh + H, dw:dw + W, :], w[dh, dw])
    return out


if __name__ == "__main__":
    # Small ImageNet-ish block: N=2, 16x16 spatial, C=64 in, Cout=128 out
    # (Cout multiple of 128 keeps output stores lane-dense).
    N, H, W, C, Cout = 2, 16, 16, 64, 128
    key = jax.random.PRNGKey(0)
    ks = jax.random.split(key, 7)

    x = jax.random.normal(ks[0], (N, H, W, C), jnp.float32)

    # BatchNorm2d(C) eval-mode parameters / running stats.
    eps = 1e-5
    gamma = jax.random.normal(ks[1], (C,)) * 0.1 + 1.0
    beta = jax.random.normal(ks[2], (C,)) * 0.1
    rmean = jax.random.normal(ks[3], (C,)) * 0.1
    rvar = jax.random.uniform(ks[4], (C,), minval=0.5, maxval=1.5)
    scale = gamma / jnp.sqrt(rvar + eps)
    shift = beta - rmean * scale

    # Conv weights (torch layout (Cout, C, K, K) -> (K, K, C, Cout)).
    w3 = jax.random.normal(ks[5], (3, 3, C, Cout)) * 0.1   # kernel_size=3, padding=1
    w1 = jax.random.normal(ks[6], (1, 1, C, Cout)) * 0.1   # kernel_size=1, padding=0

    ok = True
    for ksz, w in ((3, w3), (1, w1)):
        out = conv_forward(x, scale, shift, w, kernel_size=ksz, tile_h=8)
        out = jax.block_until_ready(out)
        ref = ref_forward(x, scale, shift, w, kernel_size=ksz)
        assert out.shape == (N, H, W, Cout)
        max_err = float(jnp.max(jnp.abs(out - ref)))
        # Tolerance accounts for bf16 MXU operands (f32 accumulation).
        ok = ok and bool(jnp.allclose(out, ref, atol=5e-2, rtol=5e-2))
        assert ok, (ksz, max_err)

    # TODO(synk): training-mode BatchNorm batch statistics, stride>1, and
    # groups>1 + ShuffleLayer are not modeled (module exercised in eval mode
    # with stride=1, groups=1, where the shuffle is inert).
    print("KERNEL_OK")
</pallas_src>

<mosaic_0001>
module attributes {stable_mosaic.version = 11 : i64} {
  func.func @bn_relu_conv_kernel(%arg0: i32, %arg1: i32, %arg2: memref<1x18x18x64xf32, #tpu.memory_space<vmem>>, %arg3: memref<2x64xf32, #tpu.memory_space<vmem>>, %arg4: memref<576x128xbf16, #tpu.memory_space<vmem>>, %arg5: memref<1x8x16x128xf32, #tpu.memory_space<vmem>>) attributes {dimension_semantics = [#tpu.dimension_semantics<parallel>, #tpu.dimension_semantics<parallel>], iteration_bounds = array<i64: 2, 2>, scalar_prefetch = 0 : i64, scratch_operands = 0 : i64, tpu.core_type = #tpu.core_type<tc>, window_params = [{transform_indices = @transform_0, window_bounds = array<i64: 1, 18, 18, 64>}, {pipeline_mode = #tpu.pipeline_mode<synchronous>, transform_indices = @transform_1, window_bounds = array<i64: 2, 64>}, {pipeline_mode = #tpu.pipeline_mode<synchronous>, transform_indices = @transform_2, window_bounds = array<i64: 576, 128>}, {transform_indices = @transform_3, window_bounds = array<i64: 1, 8, 16, 128>}]} {
    %c8_i32 = arith.constant 8 : i32
    %0 = arith.muli %arg1, %c8_i32 : i32
    %1 = tpu.assume_multiple %0, 8 : i32
    %c0 = arith.constant 0 : index
    %2 = arith.index_cast %1 : i32 to index
    %c0_0 = arith.constant 0 : index
    %c0_1 = arith.constant 0 : index
    %3 = vector.load %arg2[%c0, %2, %c0_0, %c0_1] : memref<1x18x18x64xf32, #tpu.memory_space<vmem>>, vector<1x10x18x64xf32>
    %4 = vector.shape_cast %3 : vector<1x10x18x64xf32> to vector<10x18x64xf32>
    %c0_2 = arith.constant 0 : index
    %c0_3 = arith.constant 0 : index
    %5 = vector.load %arg3[%c0_2, %c0_3] : memref<2x64xf32, #tpu.memory_space<vmem>>, vector<1x64xf32>
    %6 = vector.shape_cast %5 : vector<1x64xf32> to vector<1x1x64xf32>
    %c1 = arith.constant 1 : index
    %c0_4 = arith.constant 0 : index
    %7 = vector.load %arg3[%c1, %c0_4] : memref<2x64xf32, #tpu.memory_space<vmem>>, vector<1x64xf32>
    %8 = vector.shape_cast %7 : vector<1x64xf32> to vector<1x1x64xf32>
    %9 = vector.broadcast %6 : vector<1x1x64xf32> to vector<10x18x64xf32>
    %10 = arith.mulf %4, %9 : vector<10x18x64xf32>
    %11 = vector.broadcast %8 : vector<1x1x64xf32> to vector<10x18x64xf32>
    %12 = arith.addf %10, %11 : vector<10x18x64xf32>
    %cst = arith.constant 0.000000e+00 : f32
    %13 = vector.broadcast %cst : f32 to vector<10x18x64xf32>
    %14 = arith.maximumf %12, %13 : vector<10x18x64xf32>
    %15 = tpu.iota {dimensions = array<i32: 0>} : vector<10x18x64xi32>
    %16 = vector.broadcast %1 : i32 to vector<10x18x64xi32>
    %17 = arith.addi %16, %15 : vector<10x18x64xi32>
    %18 = tpu.iota {dimensions = array<i32: 1>} : vector<10x18x64xi32>
    %c1_i32 = arith.constant 1 : i32
    %19 = vector.broadcast %c1_i32 : i32 to vector<10x18x64xi32>
    %20 = arith.cmpi sge, %17, %19 : vector<10x18x64xi32>
    %c17_i32 = arith.constant 17 : i32
    %21 = vector.broadcast %c17_i32 : i32 to vector<10x18x64xi32>
    %22 = arith.cmpi slt, %17, %21 : vector<10x18x64xi32>
    %23 = arith.andi %20, %22 : vector<10x18x64xi1>
    %c1_i32_5 = arith.constant 1 : i32
    %24 = vector.broadcast %c1_i32_5 : i32 to vector<10x18x64xi32>
    %25 = arith.cmpi sge, %18, %24 : vector<10x18x64xi32>
    %26 = arith.andi %23, %25 : vector<10x18x64xi1>
    %c17_i32_6 = arith.constant 17 : i32
    %27 = vector.broadcast %c17_i32_6 : i32 to vector<10x18x64xi32>
    %28 = arith.cmpi slt, %18, %27 : vector<10x18x64xi32>
    %29 = arith.andi %26, %28 : vector<10x18x64xi1>
    %cst_7 = arith.constant 0.000000e+00 : f32
    %30 = vector.broadcast %cst_7 : f32 to vector<10x18x64xf32>
    %31 = arith.select %29, %14, %30 : vector<10x18x64xi1>, vector<10x18x64xf32>
    %32 = vector.extract_strided_slice %31 {offsets = [0, 0, 0], sizes = [8, 16, 64], strides = [1, 1, 1]} : vector<10x18x64xf32> to vector<8x16x64xf32>
    %33 = vector.extract_strided_slice %31 {offsets = [0, 1, 0], sizes = [8, 16, 64], strides = [1, 1, 1]} : vector<10x18x64xf32> to vector<8x16x64xf32>
    %34 = vector.extract_strided_slice %31 {offsets = [0, 2, 0], sizes = [8, 16, 64], strides = [1, 1, 1]} : vector<10x18x64xf32> to vector<8x16x64xf32>
    %35 = vector.extract_strided_slice %31 {offsets = [1, 0, 0], sizes = [8, 16, 64], strides = [1, 1, 1]} : vector<10x18x64xf32> to vector<8x16x64xf32>
    %36 = vector.extract_strided_slice %31 {offsets = [1, 1, 0], sizes = [8, 16, 64], strides = [1, 1, 1]} : vector<10x18x64xf32> to vector<8x16x64xf32>
    %37 = vector.extract_strided_slice %31 {offsets = [1, 2, 0], sizes = [8, 16, 64], strides = [1, 1, 1]} : vector<10x18x64xf32> to vector<8x16x64xf32>
    %38 = vector.extract_strided_slice %31 {offsets = [2, 0, 0], sizes = [8, 16, 64], strides = [1, 1, 1]} : vector<10x18x64xf32> to vector<8x16x64xf32>
    %39 = vector.extract_strided_slice %31 {offsets = [2, 1, 0], sizes = [8, 16, 64], strides = [1, 1, 1]} : vector<10x18x64xf32> to vector<8x16x64xf32>
    %40 = vector.extract_strided_slice %31 {offsets = [2, 2, 0], sizes = [8, 16, 64], strides = [1, 1, 1]} : vector<10x18x64xf32> to vector<8x16x64xf32>
    %41 = tpu.concatenate %32, %33, %34, %35, %36, %37, %38, %39, %40 in 2 : vector<8x16x64xf32>, vector<8x16x64xf32>, vector<8x16x64xf32>, vector<8x16x64xf32>, vector<8x16x64xf32>, vector<8x16x64xf32>, vector<8x16x64xf32>, vector<8x16x64xf32>, vector<8x16x64xf32> -> vector<8x16x576xf32>
    %42 = vector.shape_cast %41 : vector<8x16x576xf32> to vector<128x576xf32>
    %43 = arith.truncf %42 : vector<128x576xf32> to vector<128x576xbf16>
    %c0_8 = arith.constant 0 : index
    %c0_9 = arith.constant 0 : index
    %44 = vector.load %arg4[%c0_8, %c0_9] : memref<576x128xbf16, #tpu.memory_space<vmem>>, vector<576x128xbf16>
    %cst_10 = arith.constant dense<0.000000e+00> : vector<128x128xf32>
    %45 = tpu.matmul %43, %44, %cst_10 {dimension_numbers = #tpu.dot_dimension_numbers<[1], [0], [0], [1], [0, 0, 1, 1], [], []>} : vector<128x576xbf16>, vector<576x128xbf16>, vector<128x128xf32> -> vector<128x128xf32>
    %46 = vector.shape_cast %45 : vector<128x128xf32> to vector<1x8x16x128xf32>
    %c0_11 = arith.constant 0 : index
    %c0_12 = arith.constant 0 : index
    %c0_13 = arith.constant 0 : index
    %c0_14 = arith.constant 0 : index
    %47 = vector.load %arg5[%c0_11, %c0_12, %c0_13, %c0_14] : memref<1x8x16x128xf32, #tpu.memory_space<vmem>>, vector<1x8x16x128xf32>
    tpu.vector_store %arg5[%c0_11, %c0_12, %c0_13, %c0_14], %46 {strides = array<i32>} : memref<1x8x16x128xf32, #tpu.memory_space<vmem>>, vector<1x8x16x128xf32>,
    return
  }
  func.func @transform_0(%arg0: i32, %arg1: i32) -> (i32, i32, i32, i32) {
    %c0_i32 = arith.constant 0 : i32
    %c0_i32_0 = arith.constant 0 : i32
    %c0_i32_1 = arith.constant 0 : i32
    %c0_i32_2 = arith.constant 0 : i32
    return %arg0, %c0_i32, %c0_i32_0, %c0_i32_1 : i32, i32, i32, i32
  }
  func.func @transform_1(%arg0: i32, %arg1: i32) -> (i32, i32) {
    %c0_i32 = arith.constant 0 : i32
    %c0_i32_0 = arith.constant 0 : i32
    %c0_i32_1 = arith.constant 0 : i32
    return %c0_i32, %c0_i32_0 : i32, i32
  }
  func.func @transform_2(%arg0: i32, %arg1: i32) -> (i32, i32) {
    %c0_i32 = arith.constant 0 : i32
    %c0_i32_0 = arith.constant 0 : i32
    %c0_i32_1 = arith.constant 0 : i32
    return %c0_i32, %c0_i32_0 : i32, i32
  }
  func.func @transform_3(%arg0: i32, %arg1: i32) -> (i32, i32, i32, i32) {
    %c0_i32 = arith.constant 0 : i32
    %c0_i32_0 = arith.constant 0 : i32
    %c0_i32_1 = arith.constant 0 : i32
    return %arg0, %arg1, %c0_i32, %c0_i32_0 : i32, i32, i32, i32
  }
}

</mosaic_0001>

<bundles_post_ra>
// kernel: tpu_custom_call.1
= control target key start
LH: loop header
LB: loop body
LE: loop exit
PB: predicated region body
PF: predicated region fallthrough
CT: control target
= control target key end

     0   :  { %8 = vsyncpa [#allocation3], 0  ;;  %s3332_s0 = inlined_call_operand.vmem [shape: f32[2,18,18,64], index: 0, kind: input, shape index: {}]   ;;  %s3333_s1 = inlined_call_operand.vmem [shape: f32[2,64], index: 1, kind: input, shape index: {}]   ;;  %s3334_s2 = inlined_call_operand.vmem [shape: bf16[576,128], index: 2, kind: input, shape index: {}]   ;;  %s3335_s3 = inlined_call_operand.hbm [shape: f32[2,16,16,128], index: 3, kind: output, shape index: {}]  }
   0x1   :  { %10 = vsyncpa [#allocation3 + $0x1], 0  ;;  %s2177_s12 = smov 0   ;;  %s2179_s13 = smov 0  }
   0x2   :  { %s2181_s14 = smov 0   ;;  %s2183_s15 = smov 0  }
   0x3   :  { %s2185_s16 = smov 0   ;;  %s2187_s17 = smov 0  }
   0x4   :  { %s2189_s18 = smov 0   ;;  %s2191_s19 = smov 0  }
   0x5 LB: > { %s1583_s20 = sadd.s32 4294967295, %s2151_s19   ;;  %s1584_s21 = sadd.s32 4294967294, %s2151_s19   ;;  %s2151_s19 = sphi %s2191_s19, %s16_s19   ;;  %s2147_s18 = sphi %s2189_s18, %s3432_s18   ;;  %s2143_s17 = sphi %s2187_s17, %s3431_s17   ;;  %s2139_s16 = sphi %s2185_s16, %s3430_s16   ;;  %s2135_s15 = sphi %s2183_s15, %s3429_s15   ;;  %s2131_s14 = sphi %s2181_s14, %s3428_s14   ;;  %s2127_s13 = sphi %s2179_s13, %s3427_s13   ;;  %s2123_s12 = sphi %s2177_s12, %s3426_s12  }
   0x6   : > { %s25_s22 = sadd.s32 1, %s2143_s17  ;;  %s28_s23 = sadd.s32 1, %s2147_s18 }
   0x7   : > { %p26_p0 = scmp.ge.s32.totalorder %s25_s22, 2  ;;  %p115_p1 = scmp.ne.s32.totalorder %s2131_s14, %s2127_s13 }
   0x8   : > { %p116_p2 = scmp.eq.s32.totalorder %s1583_s20, 3  ;;  %p121_p5 = scmp.ne.s32.totalorder %s2127_s13, %s2123_s12 }
   0x9   : > { %s3434_s22 = smov (%p26_p0, %s25_s22), 0  ;;  %s3436_s23 = smov (!%p26_p0, %s28_s23), %s2147_s18 }
   0xa   : > { %s101_s24 = ssub.s32 %s2143_s17, %s3434_s22  ;;  %p2228_p3 = por %p116_p2, %p115_p1 }
   0xb   : > { %p30_p4 = scmp.ge.s32.totalorder %s3436_s23, 2  ;;  %p122_p6 = scmp.eq.s32.totalorder %s1584_s21, 3 }
   0xc   : > { %p1587_p7 = scmp.ge.s32.totalorder %s2151_s19, 1  ;;  %p154_p9 = scmp.lt.s32.totalorder %s2151_s19, 5 }
   0xd   : > { %s3438_s23 = smov (%p30_p4, %s3436_s23), 0  ;;  %p2237_p8 = por %p122_p6, %p121_p5 }
   0xe   : > { %s100_s27 = ssub.s32 %s2147_s18, %s3438_s23  ;;  %s105_s28 = sadd.s32 1, %s2131_s14 }
   0xf   : > { %s102_s29 = sor.u32 %s101_s24, %s100_s27  ;;  %p155_p10 = pnand %p1587_p7, %p154_p9 }
  0x10   : > { %p103_p11 = scmp.eq.s32.totalorder %s102_s29, 0 }
  0x11   : > { %158 = sbr.rel (%p155_p10) target bundleno = 462 (0x1ce), region = 32 }
  0x12   : > { %s2246_s30 = scalar_select %p103_p11, %s2131_s14, %s105_s28  }
  0x16   : > { %p178_p12 = scmp.lt.s32.totalorder %s2139_s16, 1  ;;  %s1590_s4 = sshll.u32 %s2135_s15, 3  ;;  %v328_v0 = vlaneseq  ;;  %v2023_v4 = vld [vmem:[%s3334_s2 + $0x78] sm:$0xff]   ;;  %v2272_v8 = vld [vmem:[%s3333_s1] ss:$0 sm:$0xff]  ;;  %vm482_vm7 = vcmask 1046528  }
  0x17   : > { %v2250_v1 = vstv %s1590_s4  ;;  %s1591_s8 = smul.u32 192, %s2135_s15  ;;  %1646 = vmatprep.subr.bf16.mxu0 %v2023_v4  ;;  %v2024_v7 = vld [vmem:[%s3334_s2 + $0xf8] sm:$0xff]   ;;  %v2283_v10 = vld [vmem:[%s3333_s1 + $0x1] ss:$0 sm:$0xff]  ;;  %s2153_s6 = smov 64  }
  0x18   : > { %s179_s5 = scalar_select %p178_p12, %s2139_s16, 1  ;;  %v320_v2 = vadd.s32 2, %v2250_v1  ;;  %v2254_v3 = vshrl.u32 %v328_v0, 7  ;;  %vm332_vm0 = vcmp.ge.s32.totalorder %v2250_v1, 1  ;;  %vm342_vm1 = vcmp.lt.s32.totalorder %v2250_v1, 17  ;;  %1710 = vmatprep.subr.bf16.mxu1 %v2024_v7 }
  0x19   : > { %v319_v5 = vadd.s32 1, %v2250_v1  ;;  %v2275_v9 = vadd.s32 3, %v2250_v1  ;;  %vm2285_vm4 = vmand %vm332_vm0, %vm342_vm1  ;;  %v2297_v13 = vadd.s32 4, %v2250_v1  ;;  %v2300_v14 = vadd.s32 5, %v2250_v1  ;;  %s175_s21 = sand.u32 1, %s2127_s13   ;;  %s1645_s27 = sshll.u32 %s2135_s15, 4 }
  0x1a   : > { %s1818_s9 = smul.u32 432, %s179_s5  ;;  %v2264_v6 = vadd.s32 16, %v2254_v3  ;;  %vm334_vm2 = vcmp.ge.s32.totalorder %v320_v2, 1  ;;  %vm344_vm3 = vcmp.lt.s32.totalorder %v320_v2, 17  ;;  %vm362_vm6 = vcmp.ge.s32.totalorder %v2254_v3, 1  ;;  %s1588_s24 = sshll.u32 %s175_s21, 7 }
  0x1b   : > { %vm2291_vm5 = vmand %vm334_vm2, %vm344_vm3  ;;  %vm333_vm8 = vcmp.ge.s32.totalorder %v319_v5, 1  ;;  %vm343_vm10 = vcmp.lt.s32.totalorder %v319_v5, 17  ;;  %vm335_vm11 = vcmp.ge.s32.totalorder %v2275_v9, 1  ;;  %vm345_vm12 = vcmp.lt.s32.totalorder %v2275_v9, 17  ;;  %s2154_s10 = smov [#allocation2]  }
  0x1c   : > { %s182_s28 = scalar_lea.vmem %s3332_s0, %s1818_s9  ;;  %vm397_vm9 = vcmp.lt.s32.totalorder %v2264_v6, 17  ;;  %v2315_v24 = vadd.s32 6, %v2250_v1  ;;  %vm2321_vm13 = vmand %vm2291_vm5, %vm362_vm6  ;;  %v2331_v31 = vadd.s32 7, %v2250_v1  ;;  %vm571_vm2 = vcmask 1045504   ;;  %s2063_s11 = sshll.u32 %s2154_s10, 4  ;;  %s2064_s11 = int_to_ptr.vmem [resolvable:$false] %s2063_s11 }
  0x1d   : > { %s2289_s5 = scalar_lea.vmem %s182_s28, %s1591_s8  ;;  %vm2340_vm14 = vmand %vm2291_vm5, %vm397_vm9  ;;  %vm336_vm3 = vcmp.ge.s32.totalorder %v2297_v13, 1  ;;  %v2395_v59 = vadd.s32 8, %v2250_v1  ;;  %s1641_s28 = sshll.u32 %s2139_s16, 5 }
  0x1e   : > { %v194_v15 = vld [vmem:[%s2289_s5 + $0x30] sm:$0xff]  ;;  %v195_v16 = vld [vmem:[%s2289_s5 + $0x38] sm:$0xff]  ;;  %v196_v17 = vld [vmem:[%s2289_s5 + $0x40] sm:$0x3]  ;;  %s1502_s15 = sadd.s32 %s1645_s27, %s1641_s28  ;;  %s3281_s8 = scalar_lea.sflag [#allocation3], %s175_s21 }
  0x1f   : > { %v230_v18 = vmul.f32 %v2272_v8, %v194_v15  ;;  %v231_v19 = vmul.f32 %v2272_v8, %v195_v16  ;;  %v232_v20 = vmul.f32 %v2272_v8, %v196_v17  ;;  %v188_v21 = vld [vmem:[%s2289_s5] sm:$0xff]  ;;  %v189_v22 = vld [vmem:[%s2289_s5 + $0x8] sm:$0xff]  ;;  %v190_v23 = vld [vmem:[%s2289_s5 + $0x10] sm:$0x3]  ;;  %s1642_s16 = sshll.u32 %s1502_s15, 7  ;;  %s2065_s20 = scalar_lea.vmem %s2064_s11, 4096 }
  0x20   : > { %v224_v26 = vmul.f32 %v2272_v8, %v188_v21  ;;  %v225_v27 = vmul.f32 %v2272_v8, %v189_v22  ;;  %v226_v28 = vmul.f32 %v2272_v8, %v190_v23  ;;  %v191_v29 = vld [vmem:[%s2289_s5 + $0x18] sm:$0xff]  ;;  %v192_v30 = vld [vmem:[%s2289_s5 + $0x20] sm:$0xff]  ;;  %vm2352_vm15 = vmand %vm2285_vm4, %vm362_vm6 }
  0x21   : > { %v264_v32 = vadd.f32 %v2283_v10, %v230_v18  ;;  %v265_v33 = vadd.f32 %v2283_v10, %v231_v19  ;;  %v266_v34 = vadd.f32 %v2283_v10, %v232_v20  ;;  %v227_v36 = vmul.f32 %v2272_v8, %v191_v29  ;;  %vm2360_vm0 = vmand %vm333_vm8, %vm343_vm10  ;;  %v193_v0 = vld [vmem:[%s2289_s5 + $0x28] sm:$0x3]  ;;  %v198_v11 = vld [vmem:[%s2289_s5 + $0x50] sm:$0xff] }
  0x22   : > { %v258_v37 = vadd.f32 %v2283_v10, %v224_v26  ;;  %v259_v38 = vadd.f32 %v2283_v10, %v225_v27  ;;  %v260_v39 = vadd.f32 %v2283_v10, %v226_v28  ;;  %v228_v41 = vmul.f32 %v2272_v8, %v192_v30  ;;  %vm2368_vm1 = vmand %vm2285_vm4, %vm397_vm9  ;;  %v197_v12 = vld [vmem:[%s2289_s5 + $0x48] sm:$0xff]  ;;  %v199_v19 = vld [vmem:[%s2289_s5 + $0x58] sm:$0x3] }
  0x23   : > { %v294_v42 = vmax.f32 %v264_v32, 0.0  ;;  %v295_v43 = vmax.f32 %v265_v33, 0.0  ;;  %v296_v44 = vmax.f32 %v266_v34, 0.0  ;;  %v261_v45 = vadd.f32 %v2283_v10, %v227_v36  ;;  %vm368_vm10 = vmand %vm2360_vm0, %vm362_vm6  ;;  %v200_v30 = vld [vmem:[%s2289_s5 + $0x60] sm:$0xff]  ;;  %v201_v35 = vld [vmem:[%s2289_s5 + $0x68] sm:$0xff] }
  0x24   : > { %v288_v47 = vmax.f32 %v258_v37, 0.0  ;;  %v289_v48 = vmax.f32 %v259_v38, 0.0  ;;  %v290_v49 = vmax.f32 %v260_v39, 0.0  ;;  %v262_v51 = vadd.f32 %v2283_v10, %v228_v41 }
  0x25   : > { %vm346_vm8 = vcmp.lt.s32.totalorder %v2297_v13, 17  ;;  %v2377_v52 = vsel %vm2321_vm13, %v294_v42, 0.0  ;;  %v2381_v53 = vsel %vm2291_vm5, %v295_v43, 0.0  ;;  %v2385_v54 = vsel %vm2340_vm14, %v296_v44, 0.0 }
  0x26   : > { %v291_v55 = vmax.f32 %v261_v45, 0.0  ;;  %v493_v56 = vrot.slane %v2377_v52, 1  ;;  %v494_v57 = vrot.slane %v2381_v53, 1  ;;  %v496_v58 = vrot.slane %v2385_v54, 1 }
  0x27   : > { %v2399_v60 = vsel %vm2352_vm15, %v288_v47, 0.0  ;;  %v2403_v61 = vsel %vm2285_vm4, %v289_v48, 0.0  ;;  %v2407_v62 = vsel %vm2368_vm1, %v290_v49, 0.0  ;;  %v292_v63 = vmax.f32 %v262_v51, 0.0  ;;  %vm2439_vm4 = vmand %vm335_vm11, %vm345_vm12  ;;  %v2026_v47 = vld [vmem:[%s3334_s2 + $0xb8] sm:$0xff]  }
  0x28   : > { %v2411_v2 = vsel %vm482_vm7, %v493_v56, %v494_v57  ;;  %v2414_v4 = vsel %vm482_vm7, %v494_v57, %v496_v58  ;;  %v483_v5 = vrot.slane %v2399_v60, 1  ;;  %v484_v7 = vrot.slane %v2403_v61, 1  ;;  %vm2456_vm11 = vmand %vm2360_vm0, %vm397_vm9  ;;  %v202_v58 = vld [vmem:[%s2289_s5 + $0x70] sm:$0x3]  ;;  %1711 = vmatpush3.bf16.msra.mxu1 %v2026_v47 }
  0x29   : > { %v1893_v15 = vpack.i.bf16 %v2414_v4, %v2411_v2  ;;  %v486_v16 = vrot.slane %v2407_v62, 1  ;;  %v2423_v17 = vsel %vm368_vm10, %v291_v55, 0.0  ;;  %v2427_v18 = vsel %vm2360_vm0, %v292_v63, 0.0  ;;  %vm2472_vm12 = vmand %vm2439_vm4, %vm362_vm6  ;;  %v2027_v55 = vld [vmem:[%s3334_s2 + $0x70] sm:$0xff]  }
  0x2a   : > { %v485_v20 = vsel %vm482_vm7, %v483_v5, %v484_v7  ;;  %v1898_v21 = vpack.i.bf16 %v2427_v18, %v2423_v17  ;;  %v229_v22 = vmul.f32 %v2272_v8, %v193_v0  ;;  %v577_v23 = vrot.slane %v2423_v17, 2  ;;  %vm2486_vm14 = vmand %vm2439_vm4, %vm397_vm9 }
  0x2b   : > { %1894 = vrot.lane.b32.xlu0 %v1893_v15, %s2153_s6  ;;  %v487_v26 = vsel %vm482_vm7, %v484_v7, %v486_v16  ;;  %v578_v27 = vrot.slane %v2427_v18, 2  ;;  %v233_v28 = vmul.f32 %v2272_v8, %v197_v12  ;;  %v234_v29 = vmul.f32 %v2272_v8, %v198_v11  ;;  %vm2504_vm15 = vmand %vm336_vm3, %vm346_vm8 }
  0x2c   : > { %vm337_vm5 = vcmp.ge.s32.totalorder %v2300_v14, 1  ;;  %vm347_vm13 = vcmp.lt.s32.totalorder %v2300_v14, 17  ;;  %v1903_v9 = vpack.i.bf16 %v487_v26, %v485_v20  ;;  %v263_v32 = vadd.f32 %v2283_v10, %v229_v22  ;;  %vm2536_vm0 = vmand %vm2504_vm15, %vm362_vm6 }
  0x2d   : > { %v235_v34 = vmul.f32 %v2272_v8, %v199_v19  ;;  %v2463_v36 = vadd.s32 9, %v2250_v1  ;;  %v585_v37 = vrot.slane %v2385_v54, 2  ;;  %v267_v38 = vadd.f32 %v2283_v10, %v233_v28  ;;  %v2025_v1 = vld [vmem:[%s3334_s2 + $0x38] sm:$0xff]   ;;  %vm2594_vm8 = vmand %vm337_vm5, %vm347_vm13  ;;  %v2034_v54 = vld [vmem:[%s3334_s2 + $0xa8] sm:$0xff]  }
  0x2e   : > { %v268_v39 = vadd.f32 %v2283_v10, %v234_v29  ;;  %v488_v41 = vrot.slane %v2423_v17, 1  ;;  %1904 = vrot.lane.b32.xlu1 %v1903_v9, %s2153_s6  ;;  %v293_v42 = vmax.f32 %v263_v32, 0.0  ;;  %v489_v45 = vrot.slane %v2427_v18, 1  ;;  %1647 = vmatpush3.bf16.msra.mxu0 %v2025_v1  ;;  %v203_v28 = vld [vmem:[%s2289_s5 + $0x78] sm:$0xff]  ;;  %v204_v29 = vld [vmem:[%s2289_s5 + $0x80] sm:$0xff]  ;;  %vm2606_vm10 = vmand %vm2504_vm15, %vm397_vm9 }
  0x2f   : > { %v269_v43 = vadd.f32 %v2283_v10, %v235_v34  ;;  %v582_v46 = vrot.slane %v2377_v52, 2  ;;  %1899 = vrot.lane.b32.xlu0 %v1898_v21, %s2153_s6  ;;  %v2497_v48 = vsel %vm571_vm2, %v577_v23, %v578_v27  ;;  %v297_v49 = vmax.f32 %v267_v38, 0.0  ;;  %1648 = vmatprep.subr.bf16.mxu0 %v2027_v55  ;;  %v2028_v21 = vld [vmem:[%s3334_s2 + $0xf0] sm:$0xff]   ;;  %vm2675_vm5 = vmand %vm2594_vm8, %vm397_vm9 }
  0x30   : > { %v298_v50 = vmax.f32 %v268_v39, 0.0  ;;  %v583_v51 = vrot.slane %v2381_v53, 2  ;;  %v433_v56 = vsel %vm2456_vm11, %v293_v42, 0.0  ;;  %v236_v63 = vmul.f32 %v2272_v8, %v200_v30  ;;  %v2029_v30 = vld [vmem:[%s3334_s2 + $0x30] sm:$0xff]   ;;  %1712 = vmatprep.subr.bf16.mxu1 %v2028_v21 }
  0x31   : > { %v299_v57 = vmax.f32 %v269_v43, 0.0  ;;  %v237_v0 = vmul.f32 %v2272_v8, %v201_v35  ;;  %v580_v13 = vrot.slane %v433_v56, 2  ;;  %v2518_v5 = vsel %vm2472_vm12, %v297_v49, 0.0  ;;  %v2030_v34 = vld [vmem:[%s3334_s2 + $0xb0] sm:$0xff]  }
  0x32   : > { %v2522_v7 = vsel %vm2439_vm4, %v298_v50, 0.0  ;;  %v491_v12 = vrot.slane %v433_v56, 1  ;;  %v498_v15 = vrot.slane %v2518_v5, 1  ;;  %v1913_v19 = vpack.i.bf16 %v2381_v53, %v2377_v52  ;;  %1649 = vmatpush3.bf16.msra.mxu0 %v2029_v30  ;;  %1713 = vmatpush3.bf16.msra.mxu1 %v2030_v34  ;;  %vm2634_vm4 = vmand %vm2594_vm8, %vm362_vm6  ;;  %v2036_v30 = vld [vmem:[%s3334_s2 + $0xe0] sm:$0xff]  }
  0x33   : > { %v2526_v11 = vsel %vm2486_vm14, %v299_v57, 0.0  ;;  %v499_v16 = vrot.slane %v2522_v7, 1  ;;  %vm338_vm1 = vcmp.ge.s32.totalorder %v2315_v24, 1  ;;  %vm348_vm3 = vcmp.lt.s32.totalorder %v2315_v24, 17  ;;  %v2038_v24 = vld [vmem:[%s3334_s2 + $0xa0] sm:$0xff]  }
  0x34   : > { %v2546_v22 = vsel %vm571_vm2, %v578_v27, %v580_v13  ;;  %v501_v23 = vrot.slane %v2526_v11, 1  ;;  %v2550_v25 = vsel %vm482_vm7, %v488_v41, %v489_v45  ;;  %v2553_v26 = vsel %vm571_vm2, %v582_v46, %v583_v51  ;;  %v205_v41 = vld [vmem:[%s2289_s5 + $0x88] sm:$0x3]  ;;  %vm2686_vm13 = vmand %vm338_vm1, %vm348_vm3 }
  0x35   : > { %v1908_v9 = vpack.i.bf16 %v2546_v22, %v2497_v48  ;;  %v2563_v27 = vsel %vm482_vm7, %v498_v15, %v499_v16  ;;  %v2566_v32 = vsel %vm482_vm7, %v489_v45, %v491_v12  ;;  %v2569_v33 = vsel %vm571_vm2, %v583_v51, %v585_v37  ;;  %v2031_v37 = vld [vmem:[%s3334_s2 + $0x68] sm:$0xff]   ;;  %v206_v15 = vld [vmem:[%s2289_s5 + $0x90] sm:$0xff]  ;;  %vm2750_vm11 = vmand %vm2686_vm13, %vm362_vm6 }
  0x36   : > { %v2575_v35 = vsel %vm482_vm7, %v499_v16, %v501_v23  ;;  %v238_v38 = vmul.f32 %v2272_v8, %v202_v58  ;;  %v270_v39 = vadd.f32 %v2283_v10, %v236_v63  ;;  %v271_v40 = vadd.f32 %v2283_v10, %v237_v0  ;;  %v2032_v46 = vld [vmem:[%s3334_s2 + $0xe8] sm:$0xff]   ;;  %1650 = vmatprep.subr.bf16.mxu0 %v2031_v37  ;;  %v207_v16 = vld [vmem:[%s2289_s5 + $0x98] sm:$0xff]  ;;  %vm2765_vm12 = vmand %vm2686_vm13, %vm397_vm9 }
  0x37   : > { %1909 = vrot.lane.b32.xlu1 %v1908_v9, %s2153_s6  ;;  %v1918_v1 = vpack.i.bf16 %v2575_v35, %v2563_v27  ;;  %v587_v42 = vrot.slane %v2518_v5, 2  ;;  %v588_v43 = vrot.slane %v2522_v7, 2  ;;  %v590_v44 = vrot.slane %v2526_v11, 2  ;;  %v2033_v58 = vld [vmem:[%s3334_s2 + $0x28] sm:$0xff]   ;;  %1714 = vmatprep.subr.bf16.mxu1 %v2032_v46 }
  0x38   : > { %v272_v47 = vadd.f32 %v2283_v10, %v238_v38  ;;  %v300_v49 = vmax.f32 %v270_v39, 0.0  ;;  %v301_v50 = vmax.f32 %v271_v40, 0.0  ;;  %v1923_v51 = vpack.i.bf16 %v2566_v32, %v2550_v25  ;;  %1651 = vmatpush3.bf16.msra.mxu0 %v2033_v58  ;;  %1715 = vmatpush3.bf16.msra.mxu1 %v2034_v54  ;;  %v2037_v39 = vld [vmem:[%s3334_s2 + $0x20] sm:$0xff]   ;;  %v2040_v54 = vld [vmem:[%s3334_s2 + $0xd8] sm:$0xff]  }
  0x39   : > { %1919 = vrot.lane.b32.xlu0 %v1918_v1, %s2153_s6  ;;  %v1928_v55 = vpack.i.bf16 %v2569_v33, %v2553_v26  ;;  %v239_v56 = vmul.f32 %v2272_v8, %v203_v28  ;;  %v240_v57 = vmul.f32 %v2272_v8, %v204_v29  ;;  %v1933_v12 = vpack.i.bf16 %v2522_v7, %v2518_v5  ;;  %v2035_v29 = vld [vmem:[%s3334_s2 + $0x60] sm:$0xff]  }
  0x3a   : > { %v302_v63 = vmax.f32 %v272_v47, 0.0  ;;  %v2622_v0 = vsel %vm2536_vm0, %v300_v49, 0.0  ;;  %v2626_v13 = vsel %vm2504_vm15, %v301_v50, 0.0  ;;  %v2647_v23 = vsel %vm571_vm2, %v587_v42, %v588_v43  ;;  %1652 = vmatprep.subr.bf16.mxu0 %v2035_v29  ;;  %1716 = vmatprep.subr.bf16.mxu1 %v2036_v30  ;;  %v2041_v29 = vld [vmem:[%s3334_s2 + $0x18] sm:$0xff]  }
  0x3b   : > { %1914 = vrot.lane.b32.xlu1 %v1913_v19, %s2153_s6  ;;  %v503_v20 = vrot.slane %v2622_v0, 1  ;;  %v504_v21 = vrot.slane %v2626_v13, 1  ;;  %v241_v28 = vmul.f32 %v2272_v8, %v205_v41  ;;  %v2659_v9 = vsel %vm571_vm2, %v588_v43, %v590_v44  ;;  %v208_v43 = vld [vmem:[%s2289_s5 + $0xa0] sm:$0x3] }
  0x3c   : > { %v442_v19 = vsel %vm2606_vm10, %v302_v63, 0.0  ;;  %v273_v34 = vadd.f32 %v2283_v10, %v239_v56  ;;  %v274_v38 = vadd.f32 %v2283_v10, %v240_v57  ;;  %v592_v42 = vrot.slane %v2622_v0, 2  ;;  %1653 = vmatpush3.bf16.msra.mxu0 %v2037_v39  ;;  %1717 = vmatpush3.bf16.msra.mxu1 %v2038_v24  ;;  %v210_v39 = vld [vmem:[%s2289_s5 + $0xb0] sm:$0xff] }
  0x3d   : > { %1924 = vrot.lane.b32.xlu0 %v1923_v51, %s2153_s6  ;;  %v2668_v40 = vsel %vm482_vm7, %v503_v20, %v504_v21  ;;  %v506_v41 = vrot.slane %v442_v19, 1  ;;  %v275_v37 = vadd.f32 %v2283_v10, %v241_v28  ;;  %v593_v47 = vrot.slane %v2626_v13, 2  ;;  %v209_v28 = vld [vmem:[%s2289_s5 + $0xa8] sm:$0xff]  ;;  %1718 = vmatprep.subr.bf16.mxu1 %v2040_v54  ;;  %v2043_v54 = vld [vmem:[%s3334_s2 + $0x50] sm:$0xff]  }
  0x3e   : > { %v303_v44 = vmax.f32 %v273_v34, 0.0  ;;  %v304_v46 = vmax.f32 %v274_v38, 0.0  ;;  %v595_v49 = vrot.slane %v442_v19, 2  ;;  %v242_v56 = vmul.f32 %v2272_v8, %v206_v15 }
  0x3f   : > { %1929 = vrot.lane.b32.xlu1 %v1928_v55, %s2153_s6  ;;  %v2692_v14 = vsel %vm482_vm7, %v504_v21, %v506_v41  ;;  %v305_v51 = vmax.f32 %v275_v37, 0.0  ;;  %v243_v57 = vmul.f32 %v2272_v8, %v207_v16  ;;  %v1943_v55 = vpack.i.bf16 %v2659_v9, %v2647_v23  ;;  %v2039_v16 = vld [vmem:[%s3334_s2 + $0x58] sm:$0xff]  }
  0x40   : > { %v1938_v58 = vpack.i.bf16 %v2692_v14, %v2668_v40  ;;  %v2705_v63 = vsel %vm2634_vm4, %v303_v44, 0.0  ;;  %v2709_v15 = vsel %vm2594_vm8, %v304_v46, 0.0  ;;  %v2724_v45 = vsel %vm571_vm2, %v592_v42, %v593_v47  ;;  %1654 = vmatprep.subr.bf16.mxu0 %v2039_v16  ;;  %v2042_v41 = vld [vmem:[%s3334_s2 + $0x98] sm:$0xff]  }
  0x41   : > { %v2719_v20 = vsel %vm2675_vm5, %v305_v51, 0.0  ;;  %v508_v11 = vrot.slane %v2705_v63, 1  ;;  %v509_v21 = vrot.slane %v2709_v15, 1  ;;  %v2733_v19 = vsel %vm571_vm2, %v593_v47, %v595_v49  ;;  %v211_v46 = vld [vmem:[%s2289_s5 + $0xb8] sm:$0x3]  ;;  %1655 = vmatpush3.bf16.msra.mxu0 %v2041_v29  ;;  %1719 = vmatpush3.bf16.msra.mxu1 %v2042_v41 }
  0x42   : > { %1939 = vrot.lane.b32.xlu0 %v1938_v58, %s2153_s6  ;;  %v511_v30 = vrot.slane %v2719_v20, 1  ;;  %v244_v34 = vmul.f32 %v2272_v8, %v208_v43  ;;  %v276_v38 = vadd.f32 %v2283_v10, %v242_v56  ;;  %v277_v1 = vadd.f32 %v2283_v10, %v243_v57  ;;  %1656 = vmatprep.subr.bf16.mxu0 %v2043_v54 }
  0x43   : > { %1934 = vrot.lane.b32.xlu1 %v1933_v12, %s2153_s6  ;;  %v2743_v37 = vsel %vm482_vm7, %v508_v11, %v509_v21  ;;  %v597_v43 = vrot.slane %v2705_v63, 2  ;;  %v598_v44 = vrot.slane %v2709_v15, 2  ;;  %v600_v56 = vrot.slane %v2719_v20, 2 }
  0x44   : > { %v2758_v12 = vsel %vm482_vm7, %v509_v21, %v511_v30  ;;  %v278_v47 = vadd.f32 %v2283_v10, %v244_v34  ;;  %v306_v49 = vmax.f32 %v276_v38, 0.0  ;;  %v1953_v24 = vpack.i.bf16 %v2626_v13, %v2622_v0  ;;  %v2044_v30 = vld [vmem:[%s3334_s2 + $0xd0] sm:$0xff]  }
  0x45   : > { %v1948_v57 = vpack.i.bf16 %v2758_v12, %v2743_v37  ;;  %v1958_v58 = vpack.i.bf16 %v2733_v19, %v2724_v45  ;;  %v307_v16 = vmax.f32 %v277_v1, 0.0  ;;  %v2785_v21 = vsel %vm571_vm2, %v597_v43, %v598_v44  ;;  %v2045_v34 = vld [vmem:[%s3334_s2 + $0x10] sm:$0xff]   ;;  %1720 = vmatprep.subr.bf16.mxu1 %v2044_v30  ;;  %v2047_v30 = vld [vmem:[%s3334_s2 + $0x48] sm:$0xff]  }
  0x46   : > { %1944 = vrot.lane.b32.xlu0 %v1943_v55, %s2153_s6  ;;  %v308_v11 = vmax.f32 %v278_v47, 0.0  ;;  %v2782_v20 = vsel %vm2750_vm11, %v306_v49, 0.0  ;;  %3387 = vst [vmem:[#allocation5_spill] sm:$0xff] %v2785_v21  ;;  %v245_v29 = vmul.f32 %v2272_v8, %v209_v28  ;;  %v1968_v41 = vpack.i.bf16 %v2709_v15, %v2705_v63  ;;  %v212_v47 = vld [vmem:[%s2289_s5 + $0xc0] sm:$0xff]  ;;  %1657 = vmatpush3.bf16.msra.mxu0 %v2045_v34 }
  0x47   : > { %1949 = vrot.lane.b32.xlu1 %v1948_v57, %s2153_s6  ;;  %v2797_v55 = vsel %vm2686_vm13, %v307_v16, 0.0  ;;  %v513_v38 = vrot.slane %v2782_v20, 1  ;;  %v246_v28 = vmul.f32 %v2272_v8, %v210_v39  ;;  %v247_v43 = vmul.f32 %v2272_v8, %v211_v46  ;;  %v2046_v39 = vld [vmem:[%s3334_s2 + $0x90] sm:$0xff]   ;;  %1658 = vmatprep.subr.bf16.mxu0 %v2047_v30 }
  0x48   : > { %v448_v1 = vsel %vm2765_vm12, %v308_v11, 0.0  ;;  %v514_v42 = vrot.slane %v2797_v55, 1  ;;  %v279_v50 = vadd.f32 %v2283_v10, %v245_v29  ;;  %vm339_vm14 = vcmp.ge.s32.totalorder %v2331_v31, 1  ;;  %v214_v29 = vld [vmem:[%s2289_s5 + $0xd0] sm:$0x3]  ;;  %1721 = vmatpush3.bf16.msra.mxu1 %v2046_v39  ;;  %v215_v11 = vld [vmem:[%s2289_s5 + $0xd8] sm:$0xff] }
  0x49   : > { %v516_v49 = vrot.slane %v448_v1, 1  ;;  %v280_v57 = vadd.f32 %v2283_v10, %v246_v28  ;;  %vm349_vm15 = vcmp.lt.s32.totalorder %v2331_v31, 17  ;;  %v2820_v51 = vsel %vm571_vm2, %v598_v44, %v600_v56  ;;  %v213_v31 = vld [vmem:[%s2289_s5 + $0xc8] sm:$0xff] }
  0x4a   : > { %1954 = vrot.lane.b32.xlu0 %v1953_v24, %s2153_s6  ;;  %v2817_v46 = vsel %vm482_vm7, %v513_v38, %v514_v42  ;;  %3389 = vst [vmem:[#allocation7_spill] sm:$0xff] %v2820_v51  ;;  %v281_v16 = vadd.f32 %v2283_v10, %v247_v43  ;;  %v309_v54 = vmax.f32 %v279_v50, 0.0  ;;  %vm2823_vm0 = vmand %vm339_vm14, %vm349_vm15  ;;  %v602_v56 = vrot.slane %v2782_v20, 2  ;;  %v2048_v38 = vld [vmem:[%s3334_s2 + $0xc8] sm:$0xff]  }
  0x4b   : > { %3388 = vst [vmem:[#allocation6_spill] sm:$0xff] %v2817_v46  ;;  %1959 = vrot.lane.b32.xlu1 %v1958_v58, %s2153_s6  ;;  %v2834_v24 = vsel %vm482_vm7, %v514_v42, %v516_v49  ;;  %v310_v44 = vmax.f32 %v280_v57, 0.0  ;;  %vm386_vm1 = vmand %vm2823_vm0, %vm362_vm6  ;;  %v603_v34 = vrot.slane %v2797_v55, 2  ;;  %v605_v43 = vrot.slane %v448_v1, 2  ;;  %v2049_v50 = vld [vmem:[%s3334_s2 + $0x8] sm:$0xff]   ;;  %1722 = vmatprep.subr.bf16.mxu1 %v2048_v38 }
  0x4c   : > { %3392 = vst [vmem:[#allocation8_spill] sm:$0xff] %v2834_v24  ;;  %v1963_v58 = vpack.i.bf16 %v2834_v24, %v2817_v46  ;;  %v311_v28 = vmax.f32 %v281_v16, 0.0  ;;  %vm421_vm3 = vmand %vm2823_vm0, %vm397_vm9  ;;  %v2851_v42 = vsel %vm386_vm1, %v309_v54, 0.0  ;;  %v1973_v49 = vpack.i.bf16 %v2820_v51, %v2785_v21  ;;  %1659 = vmatpush3.bf16.msra.mxu0 %v2049_v50  ;;  %v2050_v51 = vld [vmem:[%s3334_s2 + $0x88] sm:$0xff]  }
  0x4d   : > { %v2860_v57 = vsel %vm2823_vm0, %v310_v44, 0.0  ;;  %v518_v39 = vrot.slane %v2851_v42, 1  ;;  %v248_v16 = vmul.f32 %v2272_v8, %v212_v47  ;;  %v1983_v30 = vpack.i.bf16 %v2797_v55, %v2782_v20  ;;  %v216_v44 = vld [vmem:[%s2289_s5 + $0xe0] sm:$0xff]  ;;  %1723 = vmatpush3.bf16.msra.mxu1 %v2050_v51 }
  0x4e   : > { %1964 = vrot.lane.b32.xlu0 %v1963_v58, %s2153_s6  ;;  %v451_v1 = vsel %vm421_vm3, %v311_v28, 0.0  ;;  %v519_v54 = vrot.slane %v2860_v57, 1  ;;  %v2869_v24 = vsel %vm571_vm2, %v602_v56, %v603_v34  ;;  %v2875_v47 = vsel %vm571_vm2, %v603_v34, %v605_v43  ;;  %v217_v28 = vld [vmem:[%s2289_s5 + $0xe8] sm:$0x3]  ;;  %s3231_s5 = scalar_lea.vmem [#allocation2], %s1588_s24 }
  0x4f   : > { %1969 = vrot.lane.b32.xlu1 %v1968_v41, %s2153_s6  ;;  %v521_v46 = vrot.slane %v451_v1, 1  ;;  %v249_v38 = vmul.f32 %v2272_v8, %v213_v31  ;;  %v250_v58 = vmul.f32 %v2272_v8, %v214_v29  ;;  %v282_v50 = vadd.f32 %v2283_v10, %v248_v16  ;;  %v2051_v41 = vld [vmem:[%s3334_s2 + $0x40] sm:$0xff]   ;;  %s1505_s29 = sshll.u32 %s3231_s5, 4  ;;  %s3274_s29 = int_to_ptr.vmem [resolvable:$true] %s1505_s29 }
  0x50   : > { %v2884_v56 = vsel %vm482_vm7, %v518_v39, %v519_v54  ;;  %vm340_vm8 = vcmp.ge.s32.totalorder %v2395_v59, 1  ;;  %vm350_vm10 = vcmp.lt.s32.totalorder %v2395_v59, 17  ;;  %v2052_v31 = vld [vmem:[%s3334_s2 + $0xc0] sm:$0xff]   ;;  %v607_v59 = vrot.slane %v2851_v42, 2  ;;  %1660 = vmatprep.subr.bf16.mxu0 %v2051_v41  ;;  %s2059_s9 = scalar_lea.vmem %s3274_s29, 2048  ;;  %p2066_p2 = scmp.lt.s32.totalorder %s3274_s29, %s2064_s11 }
  0x51   : > { %v2896_v29 = vsel %vm482_vm7, %v519_v54, %v521_v46  ;;  %v283_v34 = vadd.f32 %v2283_v10, %v249_v38  ;;  %v284_v43 = vadd.f32 %v2283_v10, %v250_v58  ;;  %vm2900_vm4 = vmand %vm340_vm8, %vm350_vm10  ;;  %v312_v21 = vmax.f32 %v282_v50, 0.0  ;;  %v2053_v38 = vld [vmem:[%s3334_s2] sm:$0xff]   ;;  %1724 = vmatprep.subr.bf16.mxu1 %v2052_v31  ;;  %p2060_p13 = scmp.ne.s32.totalorder %s3274_s29, %s2059_s9  ;;  %p2067_p4 = scmp.lt.s32.totalorder %s2065_s20, %s2059_s9 }
  0x52   : > { %3393 = vst [vmem:[#allocation9_spill] sm:$0xff] %v2896_v29  ;;  %1974 = vrot.lane.b32.xlu0 %v1973_v49, %s2153_s6  ;;  %v1978_v16 = vpack.i.bf16 %v2896_v29, %v2884_v56  ;;  %vm389_vm5 = vmand %vm2900_vm4, %vm362_vm6  ;;  %v608_v46 = vrot.slane %v2860_v57, 2  ;;  %v610_v54 = vrot.slane %v451_v1, 2  ;;  %v251_v49 = vmul.f32 %v2272_v8, %v215_v11  ;;  %1661 = vmatpush3.bf16.msra.mxu0 %v2053_v38 }
  0x53   : > { %v313_v51 = vmax.f32 %v283_v34, 0.0  ;;  %v314_v58 = vmax.f32 %v284_v43, 0.0  ;;  %vm424_vm13 = vmand %vm2900_vm4, %vm397_vm9  ;;  %v252_v50 = vmul.f32 %v2272_v8, %v216_v44  ;;  %v1988_v1 = vpack.i.bf16 %v2875_v47, %v2869_v24  ;;  %v2054_v43 = vld [vmem:[%s3334_s2 + $0x80] sm:$0xff]   ;;  %p2061_p0 = pnand %p2060_p13, %p2228_p3  ;;  %p2068_p5 = por %p2067_p4, %p2066_p2 }
  0x54   : > { %1979 = vrot.lane.b32.xlu1 %v1978_v16, %s2153_s6  ;;  %v2925_v41 = vsel %vm389_vm5, %v312_v21, 0.0  ;;  %v253_v34 = vmul.f32 %v2272_v8, %v217_v28  ;;  %v1993_v11 = vpack.i.bf16 %v2860_v57, %v2851_v42  ;;  %v2941_v21 = vld [vmem:[%s3334_s2 + $0x118] sm:$0xff]   ;;  %v2946_v38 = vsel %vm571_vm2, %v607_v59, %v608_v46  ;;  %1725 = vmatpush3.bf16.msra.mxu1 %v2054_v43 }
  0x55   : > { %v2935_v44 = vsel %vm2900_vm4, %v313_v51, 0.0  ;;  %v454_v31 = vsel %vm424_vm13, %v314_v58, 0.0  ;;  %v679_v16 = vrot.slane %v2925_v41, 1  ;;  %v2949_v39 = vsel %vm571_vm2, %v608_v46, %v610_v54  ;;  %1786 = vmatprep.subr.bf16.mxu0 %v2941_v21  ;;  %1810 = vmatprep.subr.bf16.mxu1 %v2941_v21  ;;  %p2062_p1 = pneg %p2061_p0 }
  0x56   : > { %1984 = vrot.lane.b32.xlu0 %v1983_v30, %s2153_s6  ;;  %v680_v8 = vrot.slane %v2935_v44, 1  ;;  %v682_v28 = vrot.slane %v454_v31, 1  ;;  %v285_v51 = vadd.f32 %v2283_v10, %v251_v49  ;;  %v286_v58 = vadd.f32 %v2283_v10, %v252_v50 }
  0x57   : > { %v287_v29 = vadd.f32 %v2283_v10, %v253_v34  ;;  %vm341_vm11 = vcmp.ge.s32.totalorder %v2463_v36, 1  ;;  %vm351_vm12 = vcmp.lt.s32.totalorder %v2463_v36, 17  ;;  %v700_v46 = vrot.slane %v2925_v41, 2  ;;  %p2069_p6 = pnand %p2068_p5, %p2062_p1 }
  0x58   : > { %1989 = vrot.lane.b32.xlu1 %v1988_v1, %s2153_s6  ;;  %v2959_v30 = vsel %vm482_vm7, %v679_v16, %v680_v8  ;;  %v2962_v59 = vsel %vm482_vm7, %v680_v8, %v682_v28  ;;  %v315_v54 = vmax.f32 %v285_v51, 0.0  ;;  %v316_v49 = vmax.f32 %v286_v58, 0.0  ;;  %vm361_vm14 = vmand %vm341_vm11, %vm351_vm12 }
  0x59   : > { %v1998_v10 = vpack.i.bf16 %v2962_v59, %v2959_v30  ;;  %v317_v50 = vmax.f32 %v287_v29, 0.0  ;;  %v2003_v1 = vpack.i.bf16 %v2949_v39, %v2946_v38  ;;  %vm392_vm15 = vmand %vm361_vm14, %vm362_vm6  ;;  %v701_v34 = vrot.slane %v2935_v44, 2 }
  0x5a   : > { %1994 = vrot.lane.b32.xlu0 %v1993_v11, %s2153_s6  ;;  %v703_v36 = vrot.slane %v454_v31, 2  ;;  %vm427_vm0 = vmand %vm361_vm14, %vm397_vm9  ;;  %v2976_v43 = vsel %vm392_vm15, %v315_v54, 0.0  ;;  %v2978_v16 = vsel %vm361_vm14, %v316_v49, 0.0  ;;  %v2008_v29 = vpack.i.bf16 %v2935_v44, %v2925_v41 }
  0x5b   : > { %v2983_v11 = vsel %vm427_vm0, %v317_v50, 0.0  ;;  %v756_v3 = vrot.slane %v2976_v43, 1  ;;  %v757_v8 = vrot.slane %v2978_v16, 1  ;;  %v2989_v6 = vsel %vm571_vm2, %v700_v46, %v701_v34 }
  0x5c   : > { %1999 = vrot.lane.b32.xlu1 %v1998_v10, %s2153_s6  ;;  %v759_v31 = vrot.slane %v2983_v11, 1  ;;  %3396 = vst [vmem:[#allocation10_spill] sm:$0xff] %v2989_v6  ;;  %v2992_v28 = vsel %vm571_vm2, %v701_v34, %v703_v36  ;;  %v572_v46 = vrot.slane %v2399_v60, 2  ;;  %v573_v50 = vrot.slane %v2403_v61, 2 }
  0x5d   : > { %3397 = vst [vmem:[#allocation11_spill] sm:$0xff] %v2992_v28  ;;  %v758_v51 = vsel %vm482_vm7, %v756_v3, %v757_v8  ;;  %v2018_v49 = vpack.i.bf16 %v2992_v28, %v2989_v6  ;;  %vm782_vm6 = vcmask 523264   ;;  %v575_v34 = vrot.slane %v2407_v62, 2 }
  0x5e   : > { %2004 = vrot.lane.b32.xlu0 %v2003_v1, %s2153_s6  ;;  %v760_v10 = vsel %vm482_vm7, %v757_v8, %v759_v31 }
  0x5f   : > { %v2013_v54 = vpack.i.bf16 %v760_v10, %v758_v51  ;;  %v574_v51 = vsel %vm571_vm2, %v572_v46, %v573_v50  ;;  %v576_v6 = vsel %vm571_vm2, %v573_v50, %v575_v34  ;;  %v2056_v50 = vld [vmem:[%s3334_s2 + $0x110] sm:$0xff]  }
  0x60   : > { %2009 = vrot.lane.b32.xlu1 %v2008_v29, %s2153_s6 }
  0x62   : > { %2014 = vrot.lane.b32.xlu0 %v2013_v54, %s2153_s6 }
  0x64   : > { %2019 = vrot.lane.b32.xlu1 %v2018_v49, %s2153_s6  ;;  %s3272_s6 = scalar_lea.hbm %s3335_s3, %s1642_s16 }
  0x9d   : > { %v1895_v1 = vpop.permute.xlu0 %1894 }
  0x9e   : > { %v1897_v36 = vunpack.i.h.bf16 %v1895_v1  ;;  %v1896_v3 = vunpack.i.l.bf16 %v1895_v1 }
  0xa0   : > { %v1905_v8 = vpop.permute.xlu1 %1904  ;;  %v787_v29 = vsel %vm782_vm6, %v2377_v52, %v1896_v3  ;;  %v788_v31 = vsel %vm782_vm6, %v2381_v53, %v1897_v36 }
  0xa1   : > { %v1907_v10 = vunpack.i.h.bf16 %v1905_v8  ;;  %v1906_v54 = vunpack.i.l.bf16 %v1905_v8  ;;  %v1900_v49 = vpop.permute.xlu0 %1899  ;;  %v3012_v58 = vpack.c.bf16 %v788_v31, %v787_v29 }
  0xa2   : > { %v1902_v28 = vunpack.i.h.bf16 %v1900_v49  ;;  %v1901_v62 = vunpack.i.l.bf16 %v1900_v49 }
  0xa3   : > { %1310 = vmatprep.mubr.bf16.mxu1 %v3012_v58  ;;  %v783_v1 = vsel %vm782_vm6, %v2399_v60, %v1906_v54  ;;  %v784_v52 = vsel %vm782_vm6, %v2403_v61, %v1907_v10  ;;  %v2057_v61 = vld [vmem:[%s3334_s2 + $0x108] sm:$0xff]  }
  0xa4   : > { %v799_v53 = vsel %vm782_vm6, %v574_v51, %v1901_v62  ;;  %v800_v46 = vsel %vm782_vm6, %v576_v6, %v1902_v28  ;;  %v835_v3 = vpack.c.bf16 %v784_v52, %v783_v1 }
  0xa5   : > { %v836_v36 = vpack.c.bf16 %v800_v46, %v799_v53 }
  0xa7   : > { %1213 = vmatprep.mubr.bf16.mxu0 %v836_v36 }
  0xa8   : > { %1214 = vmatmul.mubr.bf16.vlgmr.msra.gmra.mxu0 %v835_v3 }
  0xa9   : > { %v1910_v34 = vpop.permute.xlu1 %1909  ;;  %1787 = vmatpush3.bf16.msra.mxu0 %v2941_v21 }
  0xaa   : > { %v1912_v8 = vunpack.i.h.bf16 %v1910_v34  ;;  %v1911_v29 = vunpack.i.l.bf16 %v1910_v34  ;;  %1788 = vmatprep.subr.bf16.mxu0 %v2056_v50 }
  0xab   : > { %v1920_v60 = vpop.permute.xlu0 %1919 }
  0xac   : > { %v1922_v6 = vunpack.i.h.bf16 %v1920_v60  ;;  %v1921_v28 = vunpack.i.l.bf16 %v1920_v60  ;;  %v815_v31 = vsel %vm782_vm6, %v2550_v25, %v1911_v29  ;;  %v816_v51 = vsel %vm782_vm6, %v2566_v32, %v1912_v8  ;;  %v2058_v25 = vld [vmem:[%s3334_s2 + $0x100] sm:$0xff]  }
  0xad   : > { %v1915_v10 = vpop.permute.xlu1 %1914  ;;  %v837_v54 = vpack.c.bf16 %v816_v51, %v815_v31  ;;  %1789 = vmatpush3.bf16.msra.mxu0 %v2056_v50 }
  0xae   : > { %v1917_v49 = vunpack.i.h.bf16 %v1915_v10  ;;  %v1916_v62 = vunpack.i.l.bf16 %v1915_v10  ;;  %v789_v1 = vsel %vm782_vm6, %v2518_v5, %v1921_v28  ;;  %v790_v52 = vsel %vm782_vm6, %v2522_v7, %v1922_v6  ;;  %1790 = vmatprep.subr.bf16.mxu0 %v2057_v61 }
  0xaf   : > { %1311 = vmatmul.mubr.bf16.vlgmr.msra.gmra.mxu1 %v837_v54  ;;  %v1925_v53 = vpop.permute.xlu0 %1924  ;;  %v3037_v46 = vpack.c.bf16 %v790_v52, %v789_v1 }
  0xb0   : > { %1814 = vmatpush3.bf16.msra.mxu1 %v2941_v21  ;;  %v1927_v32 = vunpack.i.h.bf16 %v1925_v53  ;;  %v1926_v36 = vunpack.i.l.bf16 %v1925_v53  ;;  %v801_v5 = vsel %vm782_vm6, %v2497_v48, %v1916_v62  ;;  %v802_v7 = vsel %vm782_vm6, %v2546_v22, %v1917_v49 }
  0xb1   : > { %v1930_v3 = vpop.permute.xlu1 %1929  ;;  %v841_v34 = vpack.c.bf16 %v802_v7, %v801_v5  ;;  %1318 = vmatprep.mubr.bf16.mxu1 %v3037_v46  ;;  %1811 = vmatprep.subr.bf16.mxu1 %v2056_v50 }
  0xb2   : > { %v1932_v8 = vunpack.i.h.bf16 %v1930_v3  ;;  %v1931_v29 = vunpack.i.l.bf16 %v1930_v3  ;;  %v785_v60 = vsel %vm782_vm6, %v2423_v17, %v1926_v36  ;;  %v786_v21 = vsel %vm782_vm6, %v2427_v18, %v1927_v32  ;;  %1791 = vmatpush3.bf16.msra.mxu0 %v2057_v61 }
  0xb3   : > { %1221 = vmatprep.mubr.bf16.mxu0 %v841_v34  ;;  %v840_v6 = vpack.c.bf16 %v786_v21, %v785_v60  ;;  %1792 = vmatprep.subr.bf16.mxu0 %v2058_v25 }
  0xb4   : > { %v1940_v48 = vpop.permute.xlu0 %1939  ;;  %v817_v22 = vsel %vm782_vm6, %v2411_v2, %v1931_v29  ;;  %v818_v28 = vsel %vm782_vm6, %v2414_v4, %v1932_v8  ;;  %1815 = vmatpush3.bf16.msra.mxu1 %v2056_v50 }
  0xb5   : > { %v1942_v31 = vunpack.i.h.bf16 %v1940_v48  ;;  %v1941_v51 = vunpack.i.l.bf16 %v1940_v48  ;;  %v842_v10 = vpack.c.bf16 %v818_v28, %v817_v22  ;;  %1222 = vmatmul.mubr.bf16.gmra.mxu0 %v840_v6  ;;  %v1935_v17 = vpop.permute.xlu1 %1934  ;;  %1812 = vmatprep.subr.bf16.mxu1 %v2057_v61 }
  0xb6   : > { %v1937_v54 = vunpack.i.h.bf16 %v1935_v17  ;;  %v1936_v18 = vunpack.i.l.bf16 %v1935_v17  ;;  %1793 = vmatpush3.bf16.msra.mxu0 %v2058_v25 }
  0xb7   : > { %1319 = vmatmul.mubr.bf16.gmra.mxu1 %v842_v10  ;;  %v791_v49 = vsel %vm782_vm6, %v2622_v0, %v1941_v51  ;;  %v792_v2 = vsel %vm782_vm6, %v2626_v13, %v1942_v31 }
  0xb8   : > { %v1945_v62 = vpop.permute.xlu0 %1944  ;;  %v3060_v1 = vpack.c.bf16 %v792_v2, %v791_v49  ;;  %v803_v4 = vsel %vm782_vm6, %v2553_v26, %v1936_v18  ;;  %v804_v50 = vsel %vm782_vm6, %v2569_v33, %v1937_v54  ;;  %1816 = vmatpush3.bf16.msra.mxu1 %v2057_v61 }
  0xb9   : > { %v1947_v52 = vunpack.i.h.bf16 %v1945_v62  ;;  %v1946_v53 = vunpack.i.l.bf16 %v1945_v62  ;;  %v1950_v32 = vpop.permute.xlu1 %1949  ;;  %v845_v36 = vpack.c.bf16 %v804_v50, %v803_v4  ;;  %1813 = vmatprep.subr.bf16.mxu1 %v2058_v25 }
  0xba   : > { %1326 = vmatprep.mubr.bf16.mxu1 %v3060_v1  ;;  %v1952_v0 = vunpack.i.h.bf16 %v1950_v32  ;;  %v1951_v5 = vunpack.i.l.bf16 %v1950_v32 }
  0xbb   : > { %1229 = vmatprep.mubr.bf16.mxu0 %v845_v36  ;;  %v819_v13 = vsel %vm782_vm6, %v2563_v27, %v1946_v53  ;;  %v820_v7 = vsel %vm782_vm6, %v2575_v35, %v1947_v52 }
  0xbc   : > { %v846_v3 = vpack.c.bf16 %v820_v7, %v819_v13  ;;  %v1955_v34 = vpop.permute.xlu0 %1954  ;;  %v793_v61 = vsel %vm782_vm6, %v2705_v63, %v1951_v5  ;;  %v794_v8 = vsel %vm782_vm6, %v2709_v15, %v1952_v0  ;;  %1817 = vmatpush3.bf16.msra.mxu1 %v2058_v25 }
  0xbd   : > { %1230 = vmatmul.mubr.bf16.gmra.mxu0 %v3012_v58  ;;  %v1957_v29 = vunpack.i.h.bf16 %v1955_v34  ;;  %v1956_v60 = vunpack.i.l.bf16 %v1955_v34  ;;  %v1960_v21 = vpop.permute.xlu1 %1959  ;;  %v3076_v6 = vpack.c.bf16 %v794_v8, %v793_v61  ;;  %v3398_v61 = vld [vmem:[#allocation5_spill] sm:$0xff] }
  0xbe   : > { %v1962_v27 = vunpack.i.h.bf16 %v1960_v21  ;;  %v1961_v48 = vunpack.i.l.bf16 %v1960_v21 }
  0xbf   : > { %1327 = vmatmul.mubr.bf16.gmra.mxu1 %v846_v3  ;;  %v805_v35 = vsel %vm782_vm6, %v2647_v23, %v1956_v60  ;;  %v806_v63 = vsel %vm782_vm6, %v2659_v9, %v1957_v29  ;;  %v3399_v29 = vld [vmem:[#allocation7_spill] sm:$0xff] }
  0xc0   : > { %1334 = vmatprep.mubr.bf16.mxu1 %v3076_v6  ;;  %v1965_v15 = vpop.permute.xlu0 %1964  ;;  %v849_v25 = vpack.c.bf16 %v806_v63, %v805_v35  ;;  %v821_v58 = vsel %vm782_vm6, %v2668_v40, %v1961_v48  ;;  %v822_v22 = vsel %vm782_vm6, %v2692_v14, %v1962_v27 }
  0xc1   : > { %v1967_v28 = vunpack.i.h.bf16 %v1965_v15  ;;  %v1966_v31 = vunpack.i.l.bf16 %v1965_v15  ;;  %v1970_v51 = vpop.permute.xlu1 %1969  ;;  %v850_v54 = vpack.c.bf16 %v822_v22, %v821_v58  ;;  %v3400_v22 = vld [vmem:[#allocation6_spill] sm:$0xff] }
  0xc2   : > { %1237 = vmatprep.mubr.bf16.mxu0 %v849_v25  ;;  %v1972_v10 = vunpack.i.h.bf16 %v1970_v51  ;;  %v1971_v17 = vunpack.i.l.bf16 %v1970_v51 }
  0xc3   : > { %v795_v18 = vsel %vm782_vm6, %v2782_v20, %v1966_v31  ;;  %v796_v49 = vsel %vm782_vm6, %v2797_v55, %v1967_v28  ;;  %v3401_v31 = vld [vmem:[#allocation8_spill] sm:$0xff] }
  0xc4   : > { %v1975_v2 = vpop.permute.xlu0 %1974  ;;  %v3091_v62 = vpack.c.bf16 %v796_v49, %v795_v18  ;;  %v807_v40 = vsel %vm782_vm6, %v2724_v45, %v1971_v17  ;;  %v808_v14 = vsel %vm782_vm6, %v2733_v19, %v1972_v10 }
  0xc5   : > { %1238 = vmatmul.mubr.bf16.gmra.mxu0 %v3037_v46  ;;  %v1977_v4 = vunpack.i.h.bf16 %v1975_v2  ;;  %v1976_v50 = vunpack.i.l.bf16 %v1975_v2  ;;  %v853_v52 = vpack.c.bf16 %v808_v14, %v807_v40 }
  0xc6   : > { %v1980_v53 = vpop.permute.xlu1 %1979 }
  0xc7   : > { %1335 = vmatmul.mubr.bf16.gmra.mxu1 %v850_v54  ;;  %v1982_v20 = vunpack.i.h.bf16 %v1980_v53  ;;  %v1981_v32 = vunpack.i.l.bf16 %v1980_v53  ;;  %1245 = vmatprep.mubr.bf16.mxu0 %v853_v52  ;;  %v823_v55 = vsel %vm782_vm6, %v2743_v37, %v1976_v50  ;;  %v824_v36 = vsel %vm782_vm6, %v2758_v12, %v1977_v4 }
  0xc8   : > { %1342 = vmatprep.mubr.bf16.mxu1 %v3091_v62  ;;  %v1985_v0 = vpop.permute.xlu0 %1984  ;;  %v854_v34 = vpack.c.bf16 %v824_v36, %v823_v55  ;;  %v3402_v55 = vld [vmem:[#allocation9_spill] sm:$0xff] }
  0xc9   : > { %v1987_v5 = vunpack.i.h.bf16 %v1985_v0  ;;  %v1986_v13 = vunpack.i.l.bf16 %v1985_v0  ;;  %v797_v46 = vsel %vm782_vm6, %v2851_v42, %v1981_v32  ;;  %v798_v7 = vsel %vm782_vm6, %v2860_v57, %v1982_v20 }
  0xca   : > { %v1990_v3 = vpop.permute.xlu1 %1989  ;;  %v859_v12 = vpack.c.bf16 %v798_v7, %v797_v46 }
  0xcb   : > { %v809_v8 = vsel %vm782_vm6, %v3398_v61, %v1986_v13  ;;  %v810_v37 = vsel %vm782_vm6, %v3399_v29, %v1987_v5  ;;  %v1992_v60 = vunpack.i.h.bf16 %v1990_v3  ;;  %v1991_v21 = vunpack.i.l.bf16 %v1990_v3 }
  0xcc   : > { %v1995_v27 = vpop.permute.xlu0 %1994  ;;  %v857_v48 = vpack.c.bf16 %v810_v37, %v809_v8  ;;  %v839_v37 = vpack.c.bf16 %v2569_v33, %v2553_v26  ;;  %v776_v26 = vrot.slane %v2983_v11, 2  ;;  %v773_v33 = vrot.slane %v2976_v43, 2 }
  0xcd   : > { %1246 = vmatmul.mubr.bf16.gmra.mxu0 %v3060_v1  ;;  %v1997_v35 = vunpack.i.h.bf16 %v1995_v27  ;;  %v1996_v42 = vunpack.i.l.bf16 %v1995_v27  ;;  %v825_v28 = vsel %vm782_vm6, %v3400_v22, %v1991_v21  ;;  %v826_v1 = vsel %vm782_vm6, %v3401_v31, %v1992_v60 }
  0xce   : > { %1253 = vmatprep.mubr.bf16.mxu0 %v857_v48  ;;  %v2000_v63 = vpop.permute.xlu1 %1999  ;;  %v858_v49 = vpack.c.bf16 %v826_v1, %v825_v28  ;;  %v856_v21 = vpack.c.bf16 %v2875_v47, %v2869_v24 }
  0xcf   : > { %1343 = vmatmul.mubr.bf16.gmra.mxu1 %v854_v34  ;;  %v2002_v57 = vunpack.i.h.bf16 %v2000_v63  ;;  %v2001_v15 = vunpack.i.l.bf16 %v2000_v63  ;;  %v811_v25 = vsel %vm782_vm6, %v2869_v24, %v1996_v42  ;;  %v812_v58 = vsel %vm782_vm6, %v2875_v47, %v1997_v35  ;;  %v3403_v47 = vld [vmem:[#allocation11_spill] sm:$0xff] }
  0xd0   : > { %1350 = vmatprep.mubr.bf16.mxu1 %v859_v12  ;;  %v2005_v51 = vpop.permute.xlu0 %2004  ;;  %v861_v54 = vpack.c.bf16 %v812_v58, %v811_v25  ;;  %v774_v24 = vrot.slane %v2978_v16, 2 }
  0xd1   : > { %v831_v10 = vsel %vm782_vm6, %v2925_v41, %v2001_v15  ;;  %v832_v17 = vsel %vm782_vm6, %v2935_v44, %v2002_v57  ;;  %v2007_v14 = vunpack.i.h.bf16 %v2005_v51  ;;  %v2006_v4 = vunpack.i.l.bf16 %v2005_v51 }
  0xd2   : > { %v2010_v18 = vpop.permute.xlu1 %2009  ;;  %v863_v50 = vpack.c.bf16 %v832_v17, %v831_v10 }
  0xd3   : > { %v2012_v2 = vunpack.i.h.bf16 %v2010_v18  ;;  %v2011_v40 = vunpack.i.l.bf16 %v2010_v18  ;;  %v827_v32 = vsel %vm782_vm6, %v2884_v56, %v2006_v4  ;;  %v828_v36 = vsel %vm782_vm6, %v3402_v55, %v2007_v14 }
  0xd4   : > { %v2015_v52 = vpop.permute.xlu0 %2014  ;;  %v862_v46 = vpack.c.bf16 %v828_v36, %v827_v32 }
  0xd5   : > { %1254 = vmatmul.mubr.bf16.gmra.mxu0 %v3076_v6  ;;  %v2017_v53 = vunpack.i.h.bf16 %v2015_v52  ;;  %v2016_v20 = vunpack.i.l.bf16 %v2015_v52  ;;  %v813_v41 = vsel %vm782_vm6, %v2946_v38, %v2011_v40  ;;  %v814_v44 = vsel %vm782_vm6, %v2949_v39, %v2012_v2 }
  0xd6   : > { %1261 = vmatprep.mubr.bf16.mxu0 %v861_v54  ;;  %v2020_v0 = vpop.permute.xlu1 %2019  ;;  %v865_v13 = vpack.c.bf16 %v814_v44, %v813_v41 }
  0xd7   : > { %1351 = vmatmul.mubr.bf16.gmra.mxu1 %v858_v49  ;;  %v833_v6 = vsel %vm782_vm6, %v2976_v43, %v2016_v20  ;;  %v834_v5 = vsel %vm782_vm6, %v2978_v16, %v2017_v53  ;;  %v2022_v7 = vunpack.i.h.bf16 %v2020_v0  ;;  %v2021_v3 = vunpack.i.l.bf16 %v2020_v0 }
  0xd8   : > { %1358 = vmatprep.mubr.bf16.mxu1 %v863_v50  ;;  %v867_v34 = vpack.c.bf16 %v834_v5, %v833_v6 }
  0xd9   : > { %v829_v56 = vsel %vm782_vm6, %v2959_v30, %v2021_v3  ;;  %v830_v8 = vsel %vm782_vm6, %v2962_v59, %v2022_v7  ;;  %v848_v30 = vpack.c.bf16 %v2733_v19, %v2724_v45  ;;  %v860_v59 = vpack.c.bf16 %v2949_v39, %v2946_v38 }
  0xda   : > { %v866_v60 = vpack.c.bf16 %v830_v8, %v829_v56  ;;  %v775_v45 = vsel %vm571_vm2, %v773_v33, %v774_v24  ;;  %v777_v19 = vsel %vm571_vm2, %v774_v24, %v776_v26  ;;  %v852_v38 = vpack.c.bf16 %v3399_v29, %v3398_v61 }
  0xdb   : > { %v868_v39 = vpack.c.bf16 %v777_v19, %v775_v45 }
  0xdd   : > { %1262 = vmatmul.mubr.bf16.gmra.mxu0 %v3091_v62  ;;  %v844_v62 = vpack.c.bf16 %v2659_v9, %v2647_v23  ;;  %v3404_v23 = vld [vmem:[#allocation10_spill] sm:$0xff] }
  0xde   : > { %1269 = vmatprep.mubr.bf16.mxu0 %v865_v13  ;;  %v3405_v9 = vpack.c.bf16 %v3403_v47, %v3404_v23 }
  0xdf   : > { %1359 = vmatmul.mubr.bf16.gmra.mxu1 %v862_v46 }
  0xe0   : > { %1366 = vmatprep.mubr.bf16.mxu1 %v867_v34 }
  0xe5   : > { %1270 = vmatmul.mubr.bf16.gmra.mxu0 %v859_v12 }
  0xe6   : > { %1794 = vmatprep.mubr.msk.bf16.mxu0 %vm782_vm6, %v839_v37 }
  0xe7   : > { %1367 = vmatmul.mubr.bf16.gmra.mxu1 %v866_v60 }
  0xe8   : > { %1802 = vmatprep.mubr.msk.bf16.mxu1 %vm782_vm6, %v856_v21 }
  0xed   : > { %1795 = vmatmul.mubr.msk.bf16.vlgmr.msra.gmra.mxu0 %vm782_vm6, %v844_v62 }
  0xee   : > { %1798 = vmatprep.mubr.msk.bf16.mxu0 %vm782_vm6, %v848_v30 }
  0xef   : > { %1803 = vmatmul.mubr.msk.bf16.vlgmr.msra.gmra.mxu1 %vm782_vm6, %v860_v59 }
  0xf0   : > { %1806 = vmatprep.mubr.msk.bf16.mxu1 %vm782_vm6, %v3405_v9 }
  0xf5   : > { %1799 = vmatmul.mubr.msk.bf16.gmra.mxu0 %vm782_vm6, %v852_v38 }
  0xf7   : > { %1807 = vmatmul.mubr.msk.bf16.gmra.mxu1 %vm782_vm6, %v868_v39 }
 0x168   : > { %v3170_v43 = vpop.f32.mrf.mxu0 }
 0x16a   : > { %v3172_v16 = vpop.f32.mrf.mxu0 }
 0x16c   : > { %v3174_v11 = vpop.f32.mrf.mxu0 }
 0x16e   : > { %v3176_v48 = vpop.f32.mrf.mxu0 }
 0x16f   : > { %v1726_v12 = vpop.f32.mrf.mxu1 }
 0x171   : > { %v1727_v27 = vpop.f32.mrf.mxu1 }
 0x172   : > { %v1728_v39 = vadd.f32 %v1727_v27, %v1726_v12  ;;  %v1667_v12 = vadd.f32 %v3176_v48, %v3174_v11 }
 0x173   : > { %v3178_v35 = vpop.f32.mrf.mxu1 }
 0x175   : > { %v3180_v42 = vpop.f32.mrf.mxu1  ;;  %v1668_v61 = vpop.f32.mrf.mxu0 }
 0x177   : > { %v1732_v29 = vpop.f32.mrf.mxu1  ;;  %v1669_v63 = vpop.f32.mrf.mxu0 }
 0x178   : > { %v1670_v45 = vadd.f32 %v1669_v63, %v1668_v61  ;;  %v1731_v61 = vadd.f32 %v3180_v42, %v3178_v35 }
 0x179   : > { %v1733_v57 = vpop.f32.mrf.mxu1  ;;  %v1671_v15 = vpop.f32.mrf.mxu0 }
 0x17a   : > { %v1734_v9 = vadd.f32 %v1733_v57, %v1732_v29 }
 0x17b   : > { %v1735_v25 = vpop.f32.mrf.mxu1  ;;  %v1672_v58 = vpop.f32.mrf.mxu0 }
 0x17d   : > { %v1736_v22 = vpop.f32.mrf.mxu1  ;;  %v3182_v28 = vpop.f32.mrf.mxu0 }
 0x17f   : > { %v3184_v31 = vpop.f32.mrf.mxu1  ;;  %v3186_v1 = vpop.f32.mrf.mxu0 }
 0x181   : > { %v3188_v51 = vpop.f32.mrf.mxu1  ;;  %v3190_v10 = vpop.f32.mrf.mxu0 }
 0x182   : > { %3406 = vst [vmem:[#allocation5_spill] sm:$0xff] %v3190_v10  ;;  %v1740_v42 = vadd.f32 %v3188_v51, %v3184_v31 }
 0x183   : > { %v3192_v17 = vpop.f32.mrf.mxu1  ;;  %v3194_v54 = vpop.f32.mrf.mxu0 }
 0x184   : > { %3407 = vst [vmem:[#allocation7_spill] sm:$0xff] %v3192_v17  ;;  %3408 = vst [vmem:[#allocation6_spill] sm:$0xff] %v3194_v54  ;;  %v1664_v54 = vadd.f32 %v3172_v16, %v3170_v43 }
 0x185   : > { %v3196_v18 = vpop.f32.mrf.mxu1  ;;  %v1680_v49 = vpop.f32.mrf.mxu0 }
 0x186   : > { %3409 = vst [vmem:[#allocation8_spill] sm:$0xff] %v3196_v18 }
 0x187   : > { %v1744_v2 = vpop.f32.mrf.mxu1  ;;  %v1681_v40 = vpop.f32.mrf.mxu0 }
 0x189   : > { %v1745_v14 = vpop.f32.mrf.mxu1  ;;  %v3198_v4 = vpop.f32.mrf.mxu0 }
 0x18b   : > { %v3200_v50 = vpop.f32.mrf.mxu1  ;;  %v3202_v52 = vpop.f32.mrf.mxu0 }
 0x18d   : > { %v3204_v53 = vpop.f32.mrf.mxu1  ;;  %v1686_v20 = vpop.f32.mrf.mxu0 }
 0x18e   : > { %v1749_v31 = vadd.f32 %v3204_v53, %v3200_v50  ;;  %v3418_v50 = vld [vmem:[#allocation7_spill] sm:$0xff]  ;;  %v3420_v53 = vld [vmem:[#allocation5_spill] sm:$0xff] }
 0x18f   : > { %v1750_v41 = vpop.f32.mrf.mxu1  ;;  %v1687_v44 = vpop.f32.mrf.mxu0 }
 0x191   : > { %v1751_v32 = vpop.f32.mrf.mxu1  ;;  %v1689_v55 = vpop.f32.mrf.mxu0 }
 0x192   : > { %v1752_v17 = vadd.f32 %v1751_v32, %v1750_v41 }
 0x193   : > { %v1753_v36 = vpop.f32.mrf.mxu1  ;;  %v1690_v0 = vpop.f32.mrf.mxu0 }
 0x195   : > { %v1754_v6 = vpop.f32.mrf.mxu1  ;;  %v1692_v5 = vpop.f32.mrf.mxu0 }
 0x197   : > { %v1756_v13 = vpop.f32.mrf.mxu1  ;;  %v1693_v46 = vpop.f32.mrf.mxu0 }
 0x198   : > { %v1694_v10 = vadd.f32 %v1693_v46, %v1692_v5  ;;  %v1313_v5 = vadd.f32 %v1728_v39, %v1664_v54 }
 0x199   : > { %v1757_v7 = vpop.f32.mrf.mxu1  ;;  %v1695_v3 = vpop.f32.mrf.mxu0 }
 0x19b   : > { %v1759_v34 = vpop.f32.mrf.mxu1  ;;  %v1696_v56 = vpop.f32.mrf.mxu0 }
 0x19c   : > { %v1697_v29 = vadd.f32 %v1696_v56, %v1695_v3  ;;  %v3421_v56 = vld [vmem:[#allocation6_spill] sm:$0xff] }
 0x19d   : > { %v1760_v8 = vpop.f32.mrf.mxu1  ;;  %v3206_v37 = vpop.f32.mrf.mxu0 }
 0x19e   : > { %3410 = vst [vmem:[#allocation9_spill] sm:$0xff] %v3206_v37  ;;  %v1321_v37 = vadd.f32 %v1734_v9, %v1670_v45  ;;  %v1761_v27 = vadd.f32 %v1760_v8, %v1759_v34  ;;  %v1679_v8 = vadd.f32 %v3421_v56, %v3420_v53 }
 0x19f   : > { %v3208_v60 = vpop.f32.mrf.mxu1  ;;  %v3210_v21 = vpop.f32.mrf.mxu0 }
 0x1a0   : > { %3411 = vst [vmem:[#allocation11_spill] sm:$0xff] %v3210_v21  ;;  %v1688_v21 = vadd.f32 %v1687_v44, %v1686_v20 }
 0x1a1   : > { %v3212_v62 = vpop.f32.mrf.mxu1  ;;  %v3214_v30 = vpop.f32.mrf.mxu0 }
 0x1a2   : > { %3412 = vst [vmem:[#allocation10_spill] sm:$0xff] %v3214_v30  ;;  %v1758_v30 = vadd.f32 %v1757_v7, %v1756_v13  ;;  %v1755_v13 = vadd.f32 %v1754_v6, %v1753_v36  ;;  %v1345_v11 = vadd.f32 %v1752_v17, %v1688_v21 }
 0x1a3   : > { %v3216_v59 = vpop.f32.mrf.mxu1  ;;  %v3218_v26 = vpop.f32.mrf.mxu0 }
 0x1a4   : > { %3413 = vst [vmem:[#allocation12_spill] sm:$0xff] %v3216_v59  ;;  %3414 = vst [vmem:[#allocation13_spill] sm:$0xff] %v3218_v26  ;;  %v1673_v59 = vadd.f32 %v1672_v58, %v1671_v15  ;;  %v1353_v63 = vadd.f32 %v1758_v30, %v1694_v10  ;;  %v1746_v15 = vadd.f32 %v1745_v14, %v1744_v2 }
 0x1a5   : > { %v3220_v33 = vpop.f32.mrf.mxu1  ;;  %v1704_v24 = vpop.f32.mrf.mxu0  ;;  %v1682_v58 = vadd.f32 %v1681_v40, %v1680_v49  ;;  %v1676_v10 = vadd.f32 %v3186_v1, %v3182_v28  ;;  %v1356_v49 = vadd.f32 %v1761_v27, %v1697_v29  ;;  %v1316_v40 = vadd.f32 %v1731_v61, %v1667_v12  ;;  %v3416_v6 = vld [vmem:[#allocation9_spill] sm:$0xff] }
 0x1a6   : > { %3415 = vst [vmem:[#allocation14_spill] sm:$0xff] %v3220_v33  ;;  %v1737_v33 = vadd.f32 %v1736_v22, %v1735_v25  ;;  %v1691_v25 = vadd.f32 %v1690_v0, %v1689_v55  ;;  %v1685_v28 = vadd.f32 %v3202_v52, %v3198_v4  ;;  %v1764_v0 = vadd.f32 %v3212_v62, %v3208_v60  ;;  %v3419_v4 = vld [vmem:[#allocation8_spill] sm:$0xff] }
 0x1a7   : > { %v1768_v47 = vpop.f32.mrf.mxu1  ;;  %v1705_v23 = vpop.f32.mrf.mxu0  ;;  %v1337_v36 = vadd.f32 %v1746_v15, %v1682_v58  ;;  %v3417_v46 = vld [vmem:[#allocation11_spill] sm:$0xff]  ;;  %v1743_v52 = vadd.f32 %v3419_v4, %v3418_v50  ;;  %v1329_v62 = vadd.f32 %v1740_v42, %v1676_v10 }
 0x1a8   : > { %v1324_v35 = vadd.f32 %v1737_v33, %v1673_v59  ;;  %v1706_v44 = vadd.f32 %v1705_v23, %v1704_v24  ;;  %v1348_v51 = vadd.f32 %v1755_v13, %v1691_v25  ;;  %v1700_v7 = vadd.f32 %v3417_v46, %v3416_v6 }
 0x1a9   : > { %v1769_v19 = vpop.f32.mrf.mxu1  ;;  %v1707_v38 = vpop.f32.mrf.mxu0  ;;  %v1340_v39 = vadd.f32 %v1749_v31, %v1685_v28 }
 0x1aa   : > { %v1770_v14 = vadd.f32 %v1769_v19, %v1768_v47  ;;  %v3422_v47 = vld [vmem:[#allocation10_spill] sm:$0xff]  ;;  %v1361_v12 = vadd.f32 %v1764_v0, %v1700_v7 }
 0x1ab   : > { %v1771_v26 = vpop.f32.mrf.mxu1  ;;  %v1708_v18 = vpop.f32.mrf.mxu0  ;;  %v3423_v23 = vld [vmem:[#allocation13_spill] sm:$0xff] }
 0x1ac   : > { %v1369_v33 = vadd.f32 %v1770_v14, %v1706_v44  ;;  %v1703_v9 = vadd.f32 %v3423_v23, %v3422_v47 }
 0x1ad   : > { %v1772_v43 = vpop.f32.mrf.mxu1  ;;  %v1796_v16 = vpop.f32.mrf.mxu0 }
 0x1ae   : > { %v1418_v57 = vadd.f32 %v1796_v16, %v1321_v37  ;;  %v1709_v37 = vadd.f32 %v1708_v18, %v1707_v38  ;;  %v1773_v30 = vadd.f32 %v1772_v43, %v1771_v26  ;;  %v3424_v18 = vld [vmem:[#allocation12_spill] sm:$0xff]  ;;  %v3425_v38 = vld [vmem:[#allocation14_spill] sm:$0xff] }
 0x1af   : > { %v1804_v22 = vpop.f32.mrf.mxu1  ;;  %v1409_v20 = vpop.f32.mrf.mxu0  ;;  %v1767_v61 = vadd.f32 %v3425_v38, %v3424_v18 }
 0x1b0   : > { %v1450_v41 = vadd.f32 %v1804_v22, %v1353_v63  ;;  %1474 = vst [vmem:[%s3231_s5 + $0x10] sm:$0xff] %v1418_v57  ;;  %v1410_v48 = vadd.f32 %v1409_v20, %v1313_v5  ;;  %v1372_v63 = vadd.f32 %v1773_v30, %v1709_v37  ;;  %v1332_v5 = vadd.f32 %v1743_v52, %v1679_v8 }
 0x1b1   : > { %v1441_v54 = vpop.f32.mrf.mxu1  ;;  %v1797_v2 = vpop.f32.mrf.mxu0  ;;  %v1364_v25 = vadd.f32 %v1767_v61, %v1703_v9 }
 0x1b2   : > { %1482 = vst [vmem:[%s3231_s5 + $0x50] sm:$0xff] %v1450_v41  ;;  %v1442_v32 = vadd.f32 %v1441_v54, %v1345_v11  ;;  %1472 = vst [vmem:[%s3231_s5] sm:$0xff] %v1410_v48  ;;  %v1421_v17 = vadd.f32 %v1797_v2, %v1324_v35 }
 0x1b3   : > { %v1805_v1 = vpop.f32.mrf.mxu1  ;;  %v1412_v55 = vpop.f32.mrf.mxu0 }
 0x1b4   : > { %1480 = vst [vmem:[%s3231_s5 + $0x40] sm:$0xff] %v1442_v32  ;;  %v1453_v3 = vadd.f32 %v1805_v1, %v1356_v49  ;;  %1475 = vst [vmem:[%s3231_s5 + $0x18] sm:$0xff] %v1421_v17  ;;  %v1413_v34 = vadd.f32 %v1412_v55, %v1316_v40 }
 0x1b5   : > { %v1444_v21 = vpop.f32.mrf.mxu1  ;;  %v1800_v60 = vpop.f32.mrf.mxu0 }
 0x1b6   : > { %1483 = vst [vmem:[%s3231_s5 + $0x58] sm:$0xff] %v1453_v3  ;;  %v1445_v59 = vadd.f32 %v1444_v21, %v1348_v51  ;;  %1473 = vst [vmem:[%s3231_s5 + $0x8] sm:$0xff] %v1413_v34  ;;  %v1434_v24 = vadd.f32 %v1800_v60, %v1337_v36 }
 0x1b7   : > { %v1808_v45 = vpop.f32.mrf.mxu1  ;;  %v1425_v19 = vpop.f32.mrf.mxu0 }
 0x1b8   : > { %1481 = vst [vmem:[%s3231_s5 + $0x48] sm:$0xff] %v1445_v59  ;;  %v1466_v26 = vadd.f32 %v1808_v45, %v1369_v33  ;;  %1478 = vst [vmem:[%s3231_s5 + $0x30] sm:$0xff] %v1434_v24  ;;  %v1426_v27 = vadd.f32 %v1425_v19, %v1329_v62 }
 0x1b9   : > { %v1457_v29 = vpop.f32.mrf.mxu1  ;;  %v1801_v43 = vpop.f32.mrf.mxu0 }
 0x1ba   : > { %1486 = vst [vmem:[%s3231_s5 + $0x70] sm:$0xff] %v1466_v26  ;;  %v1458_v16 = vadd.f32 %v1457_v29, %v1361_v12  ;;  %1476 = vst [vmem:[%s3231_s5 + $0x20] sm:$0xff] %v1426_v27  ;;  %v1437_v57 = vadd.f32 %v1801_v43, %v1340_v39 }
 0x1bb   : > { %v1809_v15 = vpop.f32.mrf.mxu1  ;;  %v1428_v58 = vpop.f32.mrf.mxu0 }
 0x1bc   : > { %1484 = vst [vmem:[%s3231_s5 + $0x60] sm:$0xff] %v1458_v16  ;;  %v1469_v13 = vadd.f32 %v1809_v15, %v1372_v63  ;;  %1479 = vst [vmem:[%s3231_s5 + $0x38] sm:$0xff] %v1437_v57  ;;  %v1429_v22 = vadd.f32 %v1428_v58, %v1332_v5 }
 0x1bd   : > { %v1460_v20 = vpop.f32.mrf.mxu1 }
 0x1be   : > { %1487 = vst [vmem:[%s3231_s5 + $0x78] sm:$0xff] %v1469_v13  ;;  %v1461_v41 = vadd.f32 %v1460_v20, %v1364_v25  ;;  %1477 = vst [vmem:[%s3231_s5 + $0x28] sm:$0xff] %v1429_v22 }
 0x1c0   : > { %1485 = vst [vmem:[%s3231_s5 + $0x68] sm:$0xff] %v1461_v41 }
 0x1c1   : > { %2072 = shalt.err (!%p2069_p6)
}
 0x1c2   : > { %s2073_s21 = scalar_lea.hbm %s3272_s6, 2048  ;;  %s2077_s27 = scalar_lea.hbm %s3335_s3, 8192 }
 0x1c3   : > { %p2074_p7 = scmp.ne.s32.totalorder %s3272_s6, %s2073_s21  ;;  %p2078_p11 = scmp.lt.s32.totalorder %s3272_s6, %s3335_s3 }
 0x1c4   : > { %p2079_p12 = scmp.lt.s32.totalorder %s2077_s27, %s2073_s21 }
 0x1c5   : > { %p2075_p9 = pnand %p2074_p7, %p2228_p3 }
 0x1c6   : > { %p2080_p13 = por %p2079_p12, %p2078_p11 }
 0x1c7   : > { %p2076_p10 = pneg %p2075_p9 }
 0x1c9   : > { %p2081_p0 = pnand %p2080_p13, %p2076_p10 }
 0x1cb   : > { %2084 = shalt.err (!%p2081_p0)
}
 0x1cc   : > { %s2155_s16 = smov 128   ;;  %s2156_s4 = smov 8  }
 0x1cd   : > { %1819 = dma.vmem_to_hbm [thread:$0]  (%p2228_p3), %s3274_s29, 2048, %s3272_s6, %s3281_s8, %s2155_s16, %s2155_s16, %s2156_s4  }
 0x1ce PF: > { %p1825_p1 = scmp.ge.s32.totalorder %s2151_s19, 2  ;;  %s1520_s7 = sand.u32 1, %s2123_s12  }
 0x1cf   : > { %s1521_s9 = scalar_lea.sflag [#allocation3], %s1520_s7 }
 0x1d0   : > { %p1822_p2 = pnand %p1825_p1, %p2237_p8 }
 0x1d2   : > { %p1823_p4 = pneg %p1822_p2 }
 0x1d4   : > { %2118 = dma.done.wait (%p1823_p4), %s1521_s9, 2048  }
 0x1d5   : > { %2120 = vsyncadd (%p1823_p4), %s1521_s9, 4294965248  ;;  %s16_s19 = sadd.s32 1, %s2151_s19   ;;  %s3426_s12 = smov %s2127_s13 }
 0x1d6   : > { %p13_p5 = scmp.ge.s32.totalorder %s16_s19, 6   ;;  %s3427_s13 = smov %s2131_s14 }
 0x1d7   : > { %s3428_s14 = smov %s2246_s30  ;;  %s3429_s15 = smov %s2143_s17 }
 0x1d8   : > { %s3430_s16 = smov %s2147_s18  ;;  %s3431_s17 = smov %s3434_s22 }
 0x1d9   : > { %s3432_s18 = smov %s3438_s23  ;;  %15 = sbr.rel (!%p13_p5) target bundleno = 5 (0x5), region = 68 }
 0x1de   :  { %1526 = vsyncpa [#allocation3], 1 }
 0x1df   :  { %1528 = vsyncpa [#allocation3 + $0x1], 1 }

</bundles_post_ra>
